<compile_context>
chip_gen: v7x
topology: tpu7x:2x2x1
jax: 0.10.0
libtpu: 0.0.40
codegen_flags: <defaults>
</compile_context>

<pallas_src>
import functools

import numpy as np
import jax
import jax.numpy as jnp
from jax import lax
from jax.experimental import pallas as pl
from jax.experimental.pallas import tpu as pltpu


# ----------------------------------------------------------------------------
# Pallas kernel
# ----------------------------------------------------------------------------
def recurrent_link_kernel(dense_ref, sparse_ref, mask_ref,
                          t0_ref, t1_ref, wd_ref, blin_ref,
                          wih_ref, whh_ref, bg_ref,
                          wpred_ref, bpred_ref,
                          h_out_ref, pred_out_ref):
    T, N, Dd = dense_ref.shape
    H = whh_ref.shape[0]

    # ---- fused input projection: dense block + one-hot embedding matmuls
    #      against tables pre-multiplied by W_lin (no lane concatenate) ----
    dense = dense_ref[...].reshape(T * N, Dd)
    sp = sparse_ref[...]                                     # (T, N, 2) int32
    proj = jnp.dot(dense, wd_ref[...], preferred_element_type=jnp.float32)
    for i, tref in enumerate((t0_ref, t1_ref)):
        E = tref.shape[0]
        idx = sp[:, :, i].reshape(T * N, 1)
        onehot = (lax.broadcasted_iota(jnp.int32, (T * N, E), 1) == idx
                  ).astype(jnp.float32)
        proj = proj + jnp.dot(onehot, tref[...],
                              preferred_element_type=jnp.float32)
    proj = jnp.maximum(proj + blin_ref[...], 0.0)            # (T*N, H)

    # ---- hoisted input-to-hidden gates: one big matmul + pre-summed biases ----
    gx = (jnp.dot(proj, wih_ref[...], preferred_element_type=jnp.float32)
          + bg_ref[...]).reshape(T, N, 4 * H)                # (T, N, 4H)

    valid = mask_ref[...] != 0                               # (T, N, 1) bool
    whh = whh_ref[...]                                       # hoisted load

    # ---- length-masked LSTM recurrence (== RNN over pack_padded_sequence) ----
    # T is a small compile-time constant: fully unroll so the scheduler can
    # overlap the non-dependent work (mask select, hseq collection, next-step
    # gates_x) with the h @ W_hh matmul on the serial chain.
    h = jnp.zeros((N, H), jnp.float32)
    c = jnp.zeros((N, H), jnp.float32)
    hs = []
    for t in range(T):
        gates = gx[t] + jnp.dot(h, whh, preferred_element_type=jnp.float32)
        sg = jax.nn.sigmoid(gates)        # full 4H-lane vreg (EUP slot)
        tg = jnp.tanh(gates)              # full 4H-lane vreg (EUP slot)
        # Residual 32-lane extracts of the activated vregs (gate order i,f,g,o).
        i_g = sg[:, 0 * H:1 * H]
        f_g = sg[:, 1 * H:2 * H]
        o_g = sg[:, 3 * H:4 * H]
        g_g = tg[:, 2 * H:3 * H]
        c_new = f_g * c + i_g * g_g
        h_new = o_g * jnp.tanh(c_new)
        v = valid[t]                                         # (N, 1) bool
        h = jnp.where(v, h_new, h)
        c = jnp.where(v, c_new, c)
        hs.append(h)

    # final hidden state per sequence (== h[-1] of torch.nn.LSTM on packed seq)
    h_out_ref[...] = h

    # ---- auxiliary head: lane-dense (T*N, 128) slab (W_pred zero-padded) ----
    hseq = jnp.stack(hs, axis=0).reshape(T * N, H)
    pred_out_ref[...] = (jnp.dot(hseq, wpred_ref[...],
                                 preferred_element_type=jnp.float32)
                         + bpred_ref[...])


# ----------------------------------------------------------------------------
# Host-side packing indices (PackedSequence.data row order)
# ----------------------------------------------------------------------------
def _packed_row_indices(lengths_np, T, N):
    """Flat (t*N + b) row indices in torch PackedSequence.data order."""
    order = np.argsort(-lengths_np, kind="stable")
    valid = lengths_np[order][None, :] > np.arange(T)[:, None]    # (T, N)
    t_idx, s_idx = np.nonzero(valid)        # row-major: t-major, sorted within t
    return t_idx * N + order[s_idx]


# ----------------------------------------------------------------------------
# Wrapper
# ----------------------------------------------------------------------------
def recurrent_link_forward(params, seq_dense, seq_sparse, num_links):
    """seq_dense: (N, T, d_dense) f32, seq_sparse: (N, T, n_sparse) int32,
    num_links: (N,) int32.  Returns (h: (N, H), output: (sum(num_links), 4))."""
    N, T, d_dense = seq_dense.shape
    H = params["w_hh_t"].shape[0]
    emb_dim = params["emb0"].shape[1]
    P = 128                                   # lane-dense pred slab width

    # time-major inputs
    dense_tm = jnp.transpose(seq_dense.astype(jnp.float32), (1, 0, 2))
    sparse_tm = jnp.transpose(seq_sparse.astype(jnp.int32), (1, 0, 2))
    # hoisted validity mask (T, N, 1)
    valid_tm = (jnp.arange(T, dtype=jnp.int32)[:, None, None]
                < num_links.astype(jnp.int32)[None, :, None]).astype(jnp.int32)

    # ---- wrapper-side weight folding (free precompute) ----
    w_lin_t = params["w_lin_t"]
    wd = w_lin_t[:d_dense]                                           # (3, H)
    t0 = params["emb0"] @ w_lin_t[d_dense:d_dense + emb_dim]         # (E0, H)
    t1 = params["emb1"] @ w_lin_t[d_dense + emb_dim:
                                  d_dense + 2 * emb_dim]             # (E1, H)
    bias_g = params["b_ih"] + params["b_hh"]                         # (1, 4H)
    w_pred_pad = jnp.zeros((H, P), jnp.float32).at[:, :4].set(params["w_pred_t"])
    b_pred_pad = jnp.zeros((1, P), jnp.float32).at[:, :4].set(params["b_pred"])

    vmem = functools.partial(pl.BlockSpec, memory_space=pltpu.MemorySpace.VMEM)
    h_out, pred_slab = pl.pallas_call(
        recurrent_link_kernel,
        out_shape=(jax.ShapeDtypeStruct((N, H), jnp.float32),
                   jax.ShapeDtypeStruct((T * N, P), jnp.float32)),
        in_specs=[vmem()] * 12,
        out_specs=(vmem(), vmem()),
        # NOTE: gridless — at this size a batch grid would be pure overhead on
        # v5e/v6e; on v7x a ("parallel",) batch grid pays off only once N grows.
    )(dense_tm, sparse_tm, valid_tm,
      t0, t1, wd, params["b_lin"],
      params["w_ih_t"], params["w_hh_t"], bias_g,
      w_pred_pad, b_pred_pad)

    # Reproduce torch PackedSequence.data row ordering (vectorized index math).
    flat_idx = _packed_row_indices(np.asarray(num_links), T, N)
    packed = pred_slab[flat_idx, :4]                     # (sum(num_links), 4)
    return h_out, packed


# ----------------------------------------------------------------------------
# Pure-JAX reference (for a silent correctness check)
# ----------------------------------------------------------------------------
def reference_forward(params, seq_dense, seq_sparse, num_links):
    N, T, _ = seq_dense.shape
    H = params["w_hh_t"].shape[0]
    emb = [params["emb0"][seq_sparse[..., 0]], params["emb1"][seq_sparse[..., 1]]]
    x = jnp.concatenate([seq_dense] + emb, axis=-1)
    proj = jax.nn.relu(x @ params["w_lin_t"] + params["b_lin"])      # (N,T,H)
    h = jnp.zeros((N, H), jnp.float32)
    c = jnp.zeros((N, H), jnp.float32)
    hs = []
    for t in range(T):
        gates = (proj[:, t] @ params["w_ih_t"] + params["b_ih"]
                 + h @ params["w_hh_t"] + params["b_hh"])
        i_g = jax.nn.sigmoid(gates[:, :H])
        f_g = jax.nn.sigmoid(gates[:, H:2 * H])
        g_g = jnp.tanh(gates[:, 2 * H:3 * H])
        o_g = jax.nn.sigmoid(gates[:, 3 * H:4 * H])
        c_new = f_g * c + i_g * g_g
        h_new = o_g * jnp.tanh(c_new)
        valid = (num_links > t)[:, None]
        h = jnp.where(valid, h_new, h)
        c = jnp.where(valid, c_new, c)
        hs.append(h)
    hseq = jnp.stack(hs, axis=0)                                     # (T,N,H)
    pred_tm = hseq @ params["w_pred_t"] + params["b_pred"]           # (T,N,4)

    flat_idx = _packed_row_indices(np.asarray(num_links), T, N)
    packed = pred_tm.reshape(T * N, 4)[flat_idx]
    return h, packed


# ----------------------------------------------------------------------------
# Deterministic parameter init (synthetic, matches module __init__ shapes)
# ----------------------------------------------------------------------------
def init_params(key, d_dense, num_embs, emb_dim, hidden_dim):
    ks = jax.random.split(key, 10)
    d_in = d_dense + emb_dim * len(num_embs)

    def nrm(k, shape, scale):
        return jax.random.normal(k, shape, jnp.float32) * scale

    return {
        # nn.Embedding tables
        "emb0": nrm(ks[0], (num_embs[0], emb_dim), 1.0),
        "emb1": nrm(ks[1], (num_embs[1], emb_dim), 1.0),
        # nn.Linear(d_in, hidden) stored transposed for x @ W
        "w_lin_t": nrm(ks[2], (d_in, hidden_dim), 1.0 / np.sqrt(d_in)),
        "b_lin": nrm(ks[3], (1, hidden_dim), 0.01),
        # nn.LSTM weights (layer 0), gate order i,f,g,o; stored transposed
        "w_ih_t": nrm(ks[4], (hidden_dim, 4 * hidden_dim), 1.0 / np.sqrt(hidden_dim)),
        "w_hh_t": nrm(ks[5], (hidden_dim, 4 * hidden_dim), 1.0 / np.sqrt(hidden_dim)),
        "b_ih": nrm(ks[6], (1, 4 * hidden_dim), 0.01),
        "b_hh": nrm(ks[7], (1, 4 * hidden_dim), 0.01),
        # nn.Linear(hidden*D, 4) with D=1, stored transposed
        "w_pred_t": nrm(ks[8], (hidden_dim, 4), 1.0 / np.sqrt(hidden_dim)),
        "b_pred": nrm(ks[9], (1, 4), 0.01),
    }


# ----------------------------------------------------------------------------
if __name__ == "__main__":
    N, T = 2, 8
    D_DENSE = 3
    N_SPARSE = 2
    NUM_EMBS = (16, 16)
    EMB_DIM = 4
    HIDDEN = 32

    key = jax.random.PRNGKey(0)
    k_par, k_dense, k_sparse = jax.random.split(key, 3)

    params = init_params(k_par, D_DENSE, NUM_EMBS, EMB_DIM, HIDDEN)

    seq_dense = jax.random.normal(k_dense, (N, T, D_DENSE), jnp.float32)
    seq_sparse = jax.random.randint(k_sparse, (N, T, N_SPARSE), 0, NUM_EMBS[0],
                                    dtype=jnp.int32)
    num_links = jnp.array([8, 5], dtype=jnp.int32)   # valid lengths per sequence

    h, out = recurrent_link_forward(params, seq_dense, seq_sparse, num_links)
    jax.block_until_ready((h, out))

    h_ref, out_ref = reference_forward(params, seq_dense, seq_sparse, num_links)
    np.testing.assert_allclose(np.asarray(h), np.asarray(h_ref),
                               rtol=1e-2, atol=1e-2)
    np.testing.assert_allclose(np.asarray(out), np.asarray(out_ref),
                               rtol=1e-2, atol=1e-2)

    assert h.shape == (N, HIDDEN)
    assert out.shape == (int(np.asarray(num_links).sum()), 4)
    print("KERNEL_OK")
</pallas_src>

<mosaic_0001>
module attributes {stable_mosaic.version = 11 : i64} {
  func.func @recurrent_link_kernel(%arg0: memref<8x2x3xf32, #tpu.memory_space<vmem>>, %arg1: memref<8x2x2xi32, #tpu.memory_space<vmem>>, %arg2: memref<8x2x1xi32, #tpu.memory_space<vmem>>, %arg3: memref<16x32xf32, #tpu.memory_space<vmem>>, %arg4: memref<16x32xf32, #tpu.memory_space<vmem>>, %arg5: memref<3x32xf32, #tpu.memory_space<vmem>>, %arg6: memref<1x32xf32, #tpu.memory_space<vmem>>, %arg7: memref<32x128xf32, #tpu.memory_space<vmem>>, %arg8: memref<32x128xf32, #tpu.memory_space<vmem>>, %arg9: memref<1x128xf32, #tpu.memory_space<vmem>>, %arg10: memref<32x128xf32, #tpu.memory_space<vmem>>, %arg11: memref<1x128xf32, #tpu.memory_space<vmem>>, %arg12: memref<2x32xf32, #tpu.memory_space<vmem>>, %arg13: memref<16x128xf32, #tpu.memory_space<vmem>>) attributes {dimension_semantics = [], scalar_prefetch = 0 : i64, scratch_operands = 0 : i64, tpu.core_type = #tpu.core_type<tc>} {
    %c0 = arith.constant 0 : index
    %c0_0 = arith.constant 0 : index
    %c0_1 = arith.constant 0 : index
    %0 = vector.load %arg0[%c0, %c0_0, %c0_1] : memref<8x2x3xf32, #tpu.memory_space<vmem>>, vector<8x2x3xf32>
    %1 = vector.shape_cast %0 : vector<8x2x3xf32> to vector<16x3xf32>
    %c0_2 = arith.constant 0 : index
    %c0_3 = arith.constant 0 : index
    %c0_4 = arith.constant 0 : index
    %2 = vector.load %arg1[%c0_2, %c0_3, %c0_4] : memref<8x2x2xi32, #tpu.memory_space<vmem>>, vector<8x2x2xi32>
    %c0_5 = arith.constant 0 : index
    %c0_6 = arith.constant 0 : index
    %3 = vector.load %arg5[%c0_5, %c0_6] : memref<3x32xf32, #tpu.memory_space<vmem>>, vector<3x32xf32>
    %cst = arith.constant dense<0.000000e+00> : vector<16x32xf32>
    %4 = tpu.matmul %1, %3, %cst {dimension_numbers = #tpu.dot_dimension_numbers<[1], [0], [0], [1], [0, 0, 1, 1], [], []>} : vector<16x3xf32>, vector<3x32xf32>, vector<16x32xf32> -> vector<16x32xf32>
    %5 = vector.extract_strided_slice %2 {offsets = [0, 0, 0], sizes = [8, 2, 1], strides = [1, 1, 1]} : vector<8x2x2xi32> to vector<8x2x1xi32>
    %6 = vector.shape_cast %5 : vector<8x2x1xi32> to vector<8x2xi32>
    %7 = vector.shape_cast %6 : vector<8x2xi32> to vector<16x1xi32>
    %8 = tpu.iota {dimensions = array<i32: 1>} : vector<16x16xi32>
    %9 = vector.broadcast %7 : vector<16x1xi32> to vector<16x16xi32>
    %10 = arith.cmpi eq, %8, %9 : vector<16x16xi32>
    %11 = arith.extui %10 : vector<16x16xi1> to vector<16x16xi32>
    %12 = arith.sitofp %11 : vector<16x16xi32> to vector<16x16xf32>
    %c0_7 = arith.constant 0 : index
    %c0_8 = arith.constant 0 : index
    %13 = vector.load %arg3[%c0_7, %c0_8] : memref<16x32xf32, #tpu.memory_space<vmem>>, vector<16x32xf32>
    %cst_9 = arith.constant dense<0.000000e+00> : vector<16x32xf32>
    %14 = tpu.matmul %12, %13, %cst_9 {dimension_numbers = #tpu.dot_dimension_numbers<[1], [0], [0], [1], [0, 0, 1, 1], [], []>} : vector<16x16xf32>, vector<16x32xf32>, vector<16x32xf32> -> vector<16x32xf32>
    %15 = arith.addf %4, %14 : vector<16x32xf32>
    %16 = vector.extract_strided_slice %2 {offsets = [0, 0, 1], sizes = [8, 2, 1], strides = [1, 1, 1]} : vector<8x2x2xi32> to vector<8x2x1xi32>
    %17 = vector.shape_cast %16 : vector<8x2x1xi32> to vector<8x2xi32>
    %18 = vector.shape_cast %17 : vector<8x2xi32> to vector<16x1xi32>
    %19 = tpu.iota {dimensions = array<i32: 1>} : vector<16x16xi32>
    %20 = vector.broadcast %18 : vector<16x1xi32> to vector<16x16xi32>
    %21 = arith.cmpi eq, %19, %20 : vector<16x16xi32>
    %22 = arith.extui %21 : vector<16x16xi1> to vector<16x16xi32>
    %23 = arith.sitofp %22 : vector<16x16xi32> to vector<16x16xf32>
    %c0_10 = arith.constant 0 : index
    %c0_11 = arith.constant 0 : index
    %24 = vector.load %arg4[%c0_10, %c0_11] : memref<16x32xf32, #tpu.memory_space<vmem>>, vector<16x32xf32>
    %cst_12 = arith.constant dense<0.000000e+00> : vector<16x32xf32>
    %25 = tpu.matmul %23, %24, %cst_12 {dimension_numbers = #tpu.dot_dimension_numbers<[1], [0], [0], [1], [0, 0, 1, 1], [], []>} : vector<16x16xf32>, vector<16x32xf32>, vector<16x32xf32> -> vector<16x32xf32>
    %26 = arith.addf %15, %25 : vector<16x32xf32>
    %c0_13 = arith.constant 0 : index
    %c0_14 = arith.constant 0 : index
    %27 = vector.load %arg6[%c0_13, %c0_14] : memref<1x32xf32, #tpu.memory_space<vmem>>, vector<1x32xf32>
    %28 = vector.broadcast %27 : vector<1x32xf32> to vector<16x32xf32>
    %29 = arith.addf %26, %28 : vector<16x32xf32>
    %cst_15 = arith.constant 0.000000e+00 : f32
    %30 = vector.broadcast %cst_15 : f32 to vector<16x32xf32>
    %31 = arith.maximumf %29, %30 : vector<16x32xf32>
    %c0_16 = arith.constant 0 : index
    %c0_17 = arith.constant 0 : index
    %32 = vector.load %arg7[%c0_16, %c0_17] : memref<32x128xf32, #tpu.memory_space<vmem>>, vector<32x128xf32>
    %cst_18 = arith.constant dense<0.000000e+00> : vector<16x128xf32>
    %33 = tpu.matmul %31, %32, %cst_18 {dimension_numbers = #tpu.dot_dimension_numbers<[1], [0], [0], [1], [0, 0, 1, 1], [], []>} : vector<16x32xf32>, vector<32x128xf32>, vector<16x128xf32> -> vector<16x128xf32>
    %c0_19 = arith.constant 0 : index
    %c0_20 = arith.constant 0 : index
    %34 = vector.load %arg9[%c0_19, %c0_20] : memref<1x128xf32, #tpu.memory_space<vmem>>, vector<1x128xf32>
    %35 = vector.broadcast %34 : vector<1x128xf32> to vector<16x128xf32>
    %36 = arith.addf %33, %35 : vector<16x128xf32>
    %37 = vector.shape_cast %36 : vector<16x128xf32> to vector<8x2x128xf32>
    %c0_21 = arith.constant 0 : index
    %c0_22 = arith.constant 0 : index
    %c0_23 = arith.constant 0 : index
    %38 = vector.load %arg2[%c0_21, %c0_22, %c0_23] : memref<8x2x1xi32, #tpu.memory_space<vmem>>, vector<8x2x1xi32>
    %c0_i32 = arith.constant 0 : i32
    %39 = vector.broadcast %c0_i32 : i32 to vector<8x2x1xi32>
    %40 = arith.cmpi ne, %38, %39 : vector<8x2x1xi32>
    %c0_24 = arith.constant 0 : index
    %c0_25 = arith.constant 0 : index
    %41 = vector.load %arg8[%c0_24, %c0_25] : memref<32x128xf32, #tpu.memory_space<vmem>>, vector<32x128xf32>
    %cst_26 = arith.constant 0.000000e+00 : f32
    %42 = vector.broadcast %cst_26 : f32 to vector<2x32xf32>
    %cst_27 = arith.constant 0.000000e+00 : f32
    %43 = vector.broadcast %cst_27 : f32 to vector<2x32xf32>
    %44 = vector.extract_strided_slice %37 {offsets = [0, 0, 0], sizes = [1, 2, 128], strides = [1, 1, 1]} : vector<8x2x128xf32> to vector<1x2x128xf32>
    %45 = vector.shape_cast %44 : vector<1x2x128xf32> to vector<2x128xf32>
    %cst_28 = arith.constant dense<0.000000e+00> : vector<2x128xf32>
    %46 = tpu.matmul %42, %41, %cst_28 {dimension_numbers = #tpu.dot_dimension_numbers<[1], [0], [0], [1], [0, 0, 1, 1], [], []>} : vector<2x32xf32>, vector<32x128xf32>, vector<2x128xf32> -> vector<2x128xf32>
    %47 = arith.addf %45, %46 : vector<2x128xf32>
    %48 = arith.negf %47 : vector<2x128xf32>
    %49 = math.exp %48 : vector<2x128xf32>
    %cst_29 = arith.constant 1.000000e+00 : f32
    %50 = vector.broadcast %cst_29 : f32 to vector<2x128xf32>
    %51 = arith.addf %50, %49 : vector<2x128xf32>
    %52 = arith.divf %50, %51 : vector<2x128xf32>
    %53 = math.tanh %47 : vector<2x128xf32>
    %54 = vector.extract_strided_slice %52 {offsets = [0, 0], sizes = [2, 32], strides = [1, 1]} : vector<2x128xf32> to vector<2x32xf32>
    %55 = vector.extract_strided_slice %52 {offsets = [0, 32], sizes = [2, 32], strides = [1, 1]} : vector<2x128xf32> to vector<2x32xf32>
    %56 = vector.extract_strided_slice %52 {offsets = [0, 96], sizes = [2, 32], strides = [1, 1]} : vector<2x128xf32> to vector<2x32xf32>
    %57 = vector.extract_strided_slice %53 {offsets = [0, 64], sizes = [2, 32], strides = [1, 1]} : vector<2x128xf32> to vector<2x32xf32>
    %58 = arith.mulf %55, %43 : vector<2x32xf32>
    %59 = arith.mulf %54, %57 : vector<2x32xf32>
    %60 = arith.addf %58, %59 : vector<2x32xf32>
    %61 = math.tanh %60 : vector<2x32xf32>
    %62 = arith.mulf %56, %61 : vector<2x32xf32>
    %63 = vector.extract_strided_slice %40 {offsets = [0, 0, 0], sizes = [1, 2, 1], strides = [1, 1, 1]} : vector<8x2x1xi1> to vector<1x2x1xi1>
    %64 = vector.shape_cast %63 : vector<1x2x1xi1> to vector<2x1xi1>
    %65 = vector.shape_cast %64 : vector<2x1xi1> to vector<2x1xi1>
    %66 = vector.broadcast %65 : vector<2x1xi1> to vector<2x32xi1>
    %67 = arith.select %66, %62, %42 : vector<2x32xi1>, vector<2x32xf32>
    %68 = vector.shape_cast %64 : vector<2x1xi1> to vector<2x1xi1>
    %69 = vector.broadcast %68 : vector<2x1xi1> to vector<2x32xi1>
    %70 = arith.select %69, %60, %43 : vector<2x32xi1>, vector<2x32xf32>
    %71 = vector.extract_strided_slice %37 {offsets = [1, 0, 0], sizes = [1, 2, 128], strides = [1, 1, 1]} : vector<8x2x128xf32> to vector<1x2x128xf32>
    %72 = vector.shape_cast %71 : vector<1x2x128xf32> to vector<2x128xf32>
    %cst_30 = arith.constant dense<0.000000e+00> : vector<2x128xf32>
    %73 = tpu.matmul %67, %41, %cst_30 {dimension_numbers = #tpu.dot_dimension_numbers<[1], [0], [0], [1], [0, 0, 1, 1], [], []>} : vector<2x32xf32>, vector<32x128xf32>, vector<2x128xf32> -> vector<2x128xf32>
    %74 = arith.addf %72, %73 : vector<2x128xf32>
    %75 = arith.negf %74 : vector<2x128xf32>
    %76 = math.exp %75 : vector<2x128xf32>
    %cst_31 = arith.constant 1.000000e+00 : f32
    %77 = vector.broadcast %cst_31 : f32 to vector<2x128xf32>
    %78 = arith.addf %77, %76 : vector<2x128xf32>
    %79 = arith.divf %77, %78 : vector<2x128xf32>
    %80 = math.tanh %74 : vector<2x128xf32>
    %81 = vector.extract_strided_slice %79 {offsets = [0, 0], sizes = [2, 32], strides = [1, 1]} : vector<2x128xf32> to vector<2x32xf32>
    %82 = vector.extract_strided_slice %79 {offsets = [0, 32], sizes = [2, 32], strides = [1, 1]} : vector<2x128xf32> to vector<2x32xf32>
    %83 = vector.extract_strided_slice %79 {offsets = [0, 96], sizes = [2, 32], strides = [1, 1]} : vector<2x128xf32> to vector<2x32xf32>
    %84 = vector.extract_strided_slice %80 {offsets = [0, 64], sizes = [2, 32], strides = [1, 1]} : vector<2x128xf32> to vector<2x32xf32>
    %85 = arith.mulf %82, %70 : vector<2x32xf32>
    %86 = arith.mulf %81, %84 : vector<2x32xf32>
    %87 = arith.addf %85, %86 : vector<2x32xf32>
    %88 = math.tanh %87 : vector<2x32xf32>
    %89 = arith.mulf %83, %88 : vector<2x32xf32>
    %90 = vector.extract_strided_slice %40 {offsets = [1, 0, 0], sizes = [1, 2, 1], strides = [1, 1, 1]} : vector<8x2x1xi1> to vector<1x2x1xi1>
    %91 = vector.shape_cast %90 : vector<1x2x1xi1> to vector<2x1xi1>
    %92 = vector.shape_cast %91 : vector<2x1xi1> to vector<2x1xi1>
    %93 = vector.broadcast %92 : vector<2x1xi1> to vector<2x32xi1>
    %94 = arith.select %93, %89, %67 : vector<2x32xi1>, vector<2x32xf32>
    %95 = vector.shape_cast %91 : vector<2x1xi1> to vector<2x1xi1>
    %96 = vector.broadcast %95 : vector<2x1xi1> to vector<2x32xi1>
    %97 = arith.select %96, %87, %70 : vector<2x32xi1>, vector<2x32xf32>
    %98 = vector.extract_strided_slice %37 {offsets = [2, 0, 0], sizes = [1, 2, 128], strides = [1, 1, 1]} : vector<8x2x128xf32> to vector<1x2x128xf32>
    %99 = vector.shape_cast %98 : vector<1x2x128xf32> to vector<2x128xf32>
    %cst_32 = arith.constant dense<0.000000e+00> : vector<2x128xf32>
    %100 = tpu.matmul %94, %41, %cst_32 {dimension_numbers = #tpu.dot_dimension_numbers<[1], [0], [0], [1], [0, 0, 1, 1], [], []>} : vector<2x32xf32>, vector<32x128xf32>, vector<2x128xf32> -> vector<2x128xf32>
    %101 = arith.addf %99, %100 : vector<2x128xf32>
    %102 = arith.negf %101 : vector<2x128xf32>
    %103 = math.exp %102 : vector<2x128xf32>
    %cst_33 = arith.constant 1.000000e+00 : f32
    %104 = vector.broadcast %cst_33 : f32 to vector<2x128xf32>
    %105 = arith.addf %104, %103 : vector<2x128xf32>
    %106 = arith.divf %104, %105 : vector<2x128xf32>
    %107 = math.tanh %101 : vector<2x128xf32>
    %108 = vector.extract_strided_slice %106 {offsets = [0, 0], sizes = [2, 32], strides = [1, 1]} : vector<2x128xf32> to vector<2x32xf32>
    %109 = vector.extract_strided_slice %106 {offsets = [0, 32], sizes = [2, 32], strides = [1, 1]} : vector<2x128xf32> to vector<2x32xf32>
    %110 = vector.extract_strided_slice %106 {offsets = [0, 96], sizes = [2, 32], strides = [1, 1]} : vector<2x128xf32> to vector<2x32xf32>
    %111 = vector.extract_strided_slice %107 {offsets = [0, 64], sizes = [2, 32], strides = [1, 1]} : vector<2x128xf32> to vector<2x32xf32>
    %112 = arith.mulf %109, %97 : vector<2x32xf32>
    %113 = arith.mulf %108, %111 : vector<2x32xf32>
    %114 = arith.addf %112, %113 : vector<2x32xf32>
    %115 = math.tanh %114 : vector<2x32xf32>
    %116 = arith.mulf %110, %115 : vector<2x32xf32>
    %117 = vector.extract_strided_slice %40 {offsets = [2, 0, 0], sizes = [1, 2, 1], strides = [1, 1, 1]} : vector<8x2x1xi1> to vector<1x2x1xi1>
    %118 = vector.shape_cast %117 : vector<1x2x1xi1> to vector<2x1xi1>
    %119 = vector.shape_cast %118 : vector<2x1xi1> to vector<2x1xi1>
    %120 = vector.broadcast %119 : vector<2x1xi1> to vector<2x32xi1>
    %121 = arith.select %120, %116, %94 : vector<2x32xi1>, vector<2x32xf32>
    %122 = vector.shape_cast %118 : vector<2x1xi1> to vector<2x1xi1>
    %123 = vector.broadcast %122 : vector<2x1xi1> to vector<2x32xi1>
    %124 = arith.select %123, %114, %97 : vector<2x32xi1>, vector<2x32xf32>
    %125 = vector.extract_strided_slice %37 {offsets = [3, 0, 0], sizes = [1, 2, 128], strides = [1, 1, 1]} : vector<8x2x128xf32> to vector<1x2x128xf32>
    %126 = vector.shape_cast %125 : vector<1x2x128xf32> to vector<2x128xf32>
    %cst_34 = arith.constant dense<0.000000e+00> : vector<2x128xf32>
    %127 = tpu.matmul %121, %41, %cst_34 {dimension_numbers = #tpu.dot_dimension_numbers<[1], [0], [0], [1], [0, 0, 1, 1], [], []>} : vector<2x32xf32>, vector<32x128xf32>, vector<2x128xf32> -> vector<2x128xf32>
    %128 = arith.addf %126, %127 : vector<2x128xf32>
    %129 = arith.negf %128 : vector<2x128xf32>
    %130 = math.exp %129 : vector<2x128xf32>
    %cst_35 = arith.constant 1.000000e+00 : f32
    %131 = vector.broadcast %cst_35 : f32 to vector<2x128xf32>
    %132 = arith.addf %131, %130 : vector<2x128xf32>
    %133 = arith.divf %131, %132 : vector<2x128xf32>
    %134 = math.tanh %128 : vector<2x128xf32>
    %135 = vector.extract_strided_slice %133 {offsets = [0, 0], sizes = [2, 32], strides = [1, 1]} : vector<2x128xf32> to vector<2x32xf32>
    %136 = vector.extract_strided_slice %133 {offsets = [0, 32], sizes = [2, 32], strides = [1, 1]} : vector<2x128xf32> to vector<2x32xf32>
    %137 = vector.extract_strided_slice %133 {offsets = [0, 96], sizes = [2, 32], strides = [1, 1]} : vector<2x128xf32> to vector<2x32xf32>
    %138 = vector.extract_strided_slice %134 {offsets = [0, 64], sizes = [2, 32], strides = [1, 1]} : vector<2x128xf32> to vector<2x32xf32>
    %139 = arith.mulf %136, %124 : vector<2x32xf32>
    %140 = arith.mulf %135, %138 : vector<2x32xf32>
    %141 = arith.addf %139, %140 : vector<2x32xf32>
    %142 = math.tanh %141 : vector<2x32xf32>
    %143 = arith.mulf %137, %142 : vector<2x32xf32>
    %144 = vector.extract_strided_slice %40 {offsets = [3, 0, 0], sizes = [1, 2, 1], strides = [1, 1, 1]} : vector<8x2x1xi1> to vector<1x2x1xi1>
    %145 = vector.shape_cast %144 : vector<1x2x1xi1> to vector<2x1xi1>
    %146 = vector.shape_cast %145 : vector<2x1xi1> to vector<2x1xi1>
    %147 = vector.broadcast %146 : vector<2x1xi1> to vector<2x32xi1>
    %148 = arith.select %147, %143, %121 : vector<2x32xi1>, vector<2x32xf32>
    %149 = vector.shape_cast %145 : vector<2x1xi1> to vector<2x1xi1>
    %150 = vector.broadcast %149 : vector<2x1xi1> to vector<2x32xi1>
    %151 = arith.select %150, %141, %124 : vector<2x32xi1>, vector<2x32xf32>
    %152 = vector.extract_strided_slice %37 {offsets = [4, 0, 0], sizes = [1, 2, 128], strides = [1, 1, 1]} : vector<8x2x128xf32> to vector<1x2x128xf32>
    %153 = vector.shape_cast %152 : vector<1x2x128xf32> to vector<2x128xf32>
    %cst_36 = arith.constant dense<0.000000e+00> : vector<2x128xf32>
    %154 = tpu.matmul %148, %41, %cst_36 {dimension_numbers = #tpu.dot_dimension_numbers<[1], [0], [0], [1], [0, 0, 1, 1], [], []>} : vector<2x32xf32>, vector<32x128xf32>, vector<2x128xf32> -> vector<2x128xf32>
    %155 = arith.addf %153, %154 : vector<2x128xf32>
    %156 = arith.negf %155 : vector<2x128xf32>
    %157 = math.exp %156 : vector<2x128xf32>
    %cst_37 = arith.constant 1.000000e+00 : f32
    %158 = vector.broadcast %cst_37 : f32 to vector<2x128xf32>
    %159 = arith.addf %158, %157 : vector<2x128xf32>
    %160 = arith.divf %158, %159 : vector<2x128xf32>
    %161 = math.tanh %155 : vector<2x128xf32>
    %162 = vector.extract_strided_slice %160 {offsets = [0, 0], sizes = [2, 32], strides = [1, 1]} : vector<2x128xf32> to vector<2x32xf32>
    %163 = vector.extract_strided_slice %160 {offsets = [0, 32], sizes = [2, 32], strides = [1, 1]} : vector<2x128xf32> to vector<2x32xf32>
    %164 = vector.extract_strided_slice %160 {offsets = [0, 96], sizes = [2, 32], strides = [1, 1]} : vector<2x128xf32> to vector<2x32xf32>
    %165 = vector.extract_strided_slice %161 {offsets = [0, 64], sizes = [2, 32], strides = [1, 1]} : vector<2x128xf32> to vector<2x32xf32>
    %166 = arith.mulf %163, %151 : vector<2x32xf32>
    %167 = arith.mulf %162, %165 : vector<2x32xf32>
    %168 = arith.addf %166, %167 : vector<2x32xf32>
    %169 = math.tanh %168 : vector<2x32xf32>
    %170 = arith.mulf %164, %169 : vector<2x32xf32>
    %171 = vector.extract_strided_slice %40 {offsets = [4, 0, 0], sizes = [1, 2, 1], strides = [1, 1, 1]} : vector<8x2x1xi1> to vector<1x2x1xi1>
    %172 = vector.shape_cast %171 : vector<1x2x1xi1> to vector<2x1xi1>
    %173 = vector.shape_cast %172 : vector<2x1xi1> to vector<2x1xi1>
    %174 = vector.broadcast %173 : vector<2x1xi1> to vector<2x32xi1>
    %175 = arith.select %174, %170, %148 : vector<2x32xi1>, vector<2x32xf32>
    %176 = vector.shape_cast %172 : vector<2x1xi1> to vector<2x1xi1>
    %177 = vector.broadcast %176 : vector<2x1xi1> to vector<2x32xi1>
    %178 = arith.select %177, %168, %151 : vector<2x32xi1>, vector<2x32xf32>
    %179 = vector.extract_strided_slice %37 {offsets = [5, 0, 0], sizes = [1, 2, 128], strides = [1, 1, 1]} : vector<8x2x128xf32> to vector<1x2x128xf32>
    %180 = vector.shape_cast %179 : vector<1x2x128xf32> to vector<2x128xf32>
    %cst_38 = arith.constant dense<0.000000e+00> : vector<2x128xf32>
    %181 = tpu.matmul %175, %41, %cst_38 {dimension_numbers = #tpu.dot_dimension_numbers<[1], [0], [0], [1], [0, 0, 1, 1], [], []>} : vector<2x32xf32>, vector<32x128xf32>, vector<2x128xf32> -> vector<2x128xf32>
    %182 = arith.addf %180, %181 : vector<2x128xf32>
    %183 = arith.negf %182 : vector<2x128xf32>
    %184 = math.exp %183 : vector<2x128xf32>
    %cst_39 = arith.constant 1.000000e+00 : f32
    %185 = vector.broadcast %cst_39 : f32 to vector<2x128xf32>
    %186 = arith.addf %185, %184 : vector<2x128xf32>
    %187 = arith.divf %185, %186 : vector<2x128xf32>
    %188 = math.tanh %182 : vector<2x128xf32>
    %189 = vector.extract_strided_slice %187 {offsets = [0, 0], sizes = [2, 32], strides = [1, 1]} : vector<2x128xf32> to vector<2x32xf32>
    %190 = vector.extract_strided_slice %187 {offsets = [0, 32], sizes = [2, 32], strides = [1, 1]} : vector<2x128xf32> to vector<2x32xf32>
    %191 = vector.extract_strided_slice %187 {offsets = [0, 96], sizes = [2, 32], strides = [1, 1]} : vector<2x128xf32> to vector<2x32xf32>
    %192 = vector.extract_strided_slice %188 {offsets = [0, 64], sizes = [2, 32], strides = [1, 1]} : vector<2x128xf32> to vector<2x32xf32>
    %193 = arith.mulf %190, %178 : vector<2x32xf32>
    %194 = arith.mulf %189, %192 : vector<2x32xf32>
    %195 = arith.addf %193, %194 : vector<2x32xf32>
    %196 = math.tanh %195 : vector<2x32xf32>
    %197 = arith.mulf %191, %196 : vector<2x32xf32>
    %198 = vector.extract_strided_slice %40 {offsets = [5, 0, 0], sizes = [1, 2, 1], strides = [1, 1, 1]} : vector<8x2x1xi1> to vector<1x2x1xi1>
    %199 = vector.shape_cast %198 : vector<1x2x1xi1> to vector<2x1xi1>
    %200 = vector.shape_cast %199 : vector<2x1xi1> to vector<2x1xi1>
    %201 = vector.broadcast %200 : vector<2x1xi1> to vector<2x32xi1>
    %202 = arith.select %201, %197, %175 : vector<2x32xi1>, vector<2x32xf32>
    %203 = vector.shape_cast %199 : vector<2x1xi1> to vector<2x1xi1>
    %204 = vector.broadcast %203 : vector<2x1xi1> to vector<2x32xi1>
    %205 = arith.select %204, %195, %178 : vector<2x32xi1>, vector<2x32xf32>
    %206 = vector.extract_strided_slice %37 {offsets = [6, 0, 0], sizes = [1, 2, 128], strides = [1, 1, 1]} : vector<8x2x128xf32> to vector<1x2x128xf32>
    %207 = vector.shape_cast %206 : vector<1x2x128xf32> to vector<2x128xf32>
    %cst_40 = arith.constant dense<0.000000e+00> : vector<2x128xf32>
    %208 = tpu.matmul %202, %41, %cst_40 {dimension_numbers = #tpu.dot_dimension_numbers<[1], [0], [0], [1], [0, 0, 1, 1], [], []>} : vector<2x32xf32>, vector<32x128xf32>, vector<2x128xf32> -> vector<2x128xf32>
    %209 = arith.addf %207, %208 : vector<2x128xf32>
    %210 = arith.negf %209 : vector<2x128xf32>
    %211 = math.exp %210 : vector<2x128xf32>
    %cst_41 = arith.constant 1.000000e+00 : f32
    %212 = vector.broadcast %cst_41 : f32 to vector<2x128xf32>
    %213 = arith.addf %212, %211 : vector<2x128xf32>
    %214 = arith.divf %212, %213 : vector<2x128xf32>
    %215 = math.tanh %209 : vector<2x128xf32>
    %216 = vector.extract_strided_slice %214 {offsets = [0, 0], sizes = [2, 32], strides = [1, 1]} : vector<2x128xf32> to vector<2x32xf32>
    %217 = vector.extract_strided_slice %214 {offsets = [0, 32], sizes = [2, 32], strides = [1, 1]} : vector<2x128xf32> to vector<2x32xf32>
    %218 = vector.extract_strided_slice %214 {offsets = [0, 96], sizes = [2, 32], strides = [1, 1]} : vector<2x128xf32> to vector<2x32xf32>
    %219 = vector.extract_strided_slice %215 {offsets = [0, 64], sizes = [2, 32], strides = [1, 1]} : vector<2x128xf32> to vector<2x32xf32>
    %220 = arith.mulf %217, %205 : vector<2x32xf32>
    %221 = arith.mulf %216, %219 : vector<2x32xf32>
    %222 = arith.addf %220, %221 : vector<2x32xf32>
    %223 = math.tanh %222 : vector<2x32xf32>
    %224 = arith.mulf %218, %223 : vector<2x32xf32>
    %225 = vector.extract_strided_slice %40 {offsets = [6, 0, 0], sizes = [1, 2, 1], strides = [1, 1, 1]} : vector<8x2x1xi1> to vector<1x2x1xi1>
    %226 = vector.shape_cast %225 : vector<1x2x1xi1> to vector<2x1xi1>
    %227 = vector.shape_cast %226 : vector<2x1xi1> to vector<2x1xi1>
    %228 = vector.broadcast %227 : vector<2x1xi1> to vector<2x32xi1>
    %229 = arith.select %228, %224, %202 : vector<2x32xi1>, vector<2x32xf32>
    %230 = vector.shape_cast %226 : vector<2x1xi1> to vector<2x1xi1>
    %231 = vector.broadcast %230 : vector<2x1xi1> to vector<2x32xi1>
    %232 = arith.select %231, %222, %205 : vector<2x32xi1>, vector<2x32xf32>
    %233 = vector.extract_strided_slice %37 {offsets = [7, 0, 0], sizes = [1, 2, 128], strides = [1, 1, 1]} : vector<8x2x128xf32> to vector<1x2x128xf32>
    %234 = vector.shape_cast %233 : vector<1x2x128xf32> to vector<2x128xf32>
    %cst_42 = arith.constant dense<0.000000e+00> : vector<2x128xf32>
    %235 = tpu.matmul %229, %41, %cst_42 {dimension_numbers = #tpu.dot_dimension_numbers<[1], [0], [0], [1], [0, 0, 1, 1], [], []>} : vector<2x32xf32>, vector<32x128xf32>, vector<2x128xf32> -> vector<2x128xf32>
    %236 = arith.addf %234, %235 : vector<2x128xf32>
    %237 = arith.negf %236 : vector<2x128xf32>
    %238 = math.exp %237 : vector<2x128xf32>
    %cst_43 = arith.constant 1.000000e+00 : f32
    %239 = vector.broadcast %cst_43 : f32 to vector<2x128xf32>
    %240 = arith.addf %239, %238 : vector<2x128xf32>
    %241 = arith.divf %239, %240 : vector<2x128xf32>
    %242 = math.tanh %236 : vector<2x128xf32>
    %243 = vector.extract_strided_slice %241 {offsets = [0, 0], sizes = [2, 32], strides = [1, 1]} : vector<2x128xf32> to vector<2x32xf32>
    %244 = vector.extract_strided_slice %241 {offsets = [0, 32], sizes = [2, 32], strides = [1, 1]} : vector<2x128xf32> to vector<2x32xf32>
    %245 = vector.extract_strided_slice %241 {offsets = [0, 96], sizes = [2, 32], strides = [1, 1]} : vector<2x128xf32> to vector<2x32xf32>
    %246 = vector.extract_strided_slice %242 {offsets = [0, 64], sizes = [2, 32], strides = [1, 1]} : vector<2x128xf32> to vector<2x32xf32>
    %247 = arith.mulf %244, %232 : vector<2x32xf32>
    %248 = arith.mulf %243, %246 : vector<2x32xf32>
    %249 = arith.addf %247, %248 : vector<2x32xf32>
    %250 = math.tanh %249 : vector<2x32xf32>
    %251 = arith.mulf %245, %250 : vector<2x32xf32>
    %252 = vector.extract_strided_slice %40 {offsets = [7, 0, 0], sizes = [1, 2, 1], strides = [1, 1, 1]} : vector<8x2x1xi1> to vector<1x2x1xi1>
    %253 = vector.shape_cast %252 : vector<1x2x1xi1> to vector<2x1xi1>
    %254 = vector.shape_cast %253 : vector<2x1xi1> to vector<2x1xi1>
    %255 = vector.broadcast %254 : vector<2x1xi1> to vector<2x32xi1>
    %256 = arith.select %255, %251, %229 : vector<2x32xi1>, vector<2x32xf32>
    %c0_44 = arith.constant 0 : index
    %c0_45 = arith.constant 0 : index
    %257 = vector.load %arg12[%c0_44, %c0_45] : memref<2x32xf32, #tpu.memory_space<vmem>>, vector<2x32xf32>
    tpu.vector_store %arg12[%c0_44, %c0_45], %256 {strides = array<i32>} : memref<2x32xf32, #tpu.memory_space<vmem>>, vector<2x32xf32>,
    %258 = vector.shape_cast %67 : vector<2x32xf32> to vector<1x2x32xf32>
    %259 = vector.shape_cast %94 : vector<2x32xf32> to vector<1x2x32xf32>
    %260 = vector.shape_cast %121 : vector<2x32xf32> to vector<1x2x32xf32>
    %261 = vector.shape_cast %148 : vector<2x32xf32> to vector<1x2x32xf32>
    %262 = vector.shape_cast %175 : vector<2x32xf32> to vector<1x2x32xf32>
    %263 = vector.shape_cast %202 : vector<2x32xf32> to vector<1x2x32xf32>
    %264 = vector.shape_cast %229 : vector<2x32xf32> to vector<1x2x32xf32>
    %265 = vector.shape_cast %256 : vector<2x32xf32> to vector<1x2x32xf32>
    %266 = tpu.concatenate %258, %259, %260, %261, %262, %263, %264, %265 in 0 : vector<1x2x32xf32>, vector<1x2x32xf32>, vector<1x2x32xf32>, vector<1x2x32xf32>, vector<1x2x32xf32>, vector<1x2x32xf32>, vector<1x2x32xf32>, vector<1x2x32xf32> -> vector<8x2x32xf32>
    %267 = vector.shape_cast %266 : vector<8x2x32xf32> to vector<16x32xf32>
    %c0_46 = arith.constant 0 : index
    %c0_47 = arith.constant 0 : index
    %268 = vector.load %arg10[%c0_46, %c0_47] : memref<32x128xf32, #tpu.memory_space<vmem>>, vector<32x128xf32>
    %cst_48 = arith.constant dense<0.000000e+00> : vector<16x128xf32>
    %269 = tpu.matmul %267, %268, %cst_48 {dimension_numbers = #tpu.dot_dimension_numbers<[1], [0], [0], [1], [0, 0, 1, 1], [], []>} : vector<16x32xf32>, vector<32x128xf32>, vector<16x128xf32> -> vector<16x128xf32>
    %c0_49 = arith.constant 0 : index
    %c0_50 = arith.constant 0 : index
    %270 = vector.load %arg11[%c0_49, %c0_50] : memref<1x128xf32, #tpu.memory_space<vmem>>, vector<1x128xf32>
    %271 = vector.broadcast %270 : vector<1x128xf32> to vector<16x128xf32>
    %272 = arith.addf %269, %271 : vector<16x128xf32>
    %c0_51 = arith.constant 0 : index
    %c0_52 = arith.constant 0 : index
    %273 = vector.load %arg13[%c0_51, %c0_52] : memref<16x128xf32, #tpu.memory_space<vmem>>, vector<16x128xf32>
    tpu.vector_store %arg13[%c0_51, %c0_52], %272 {strides = array<i32>} : memref<16x128xf32, #tpu.memory_space<vmem>>, vector<16x128xf32>,
    return
  }
}

</mosaic_0001>

<bundles_post_ra>
// kernel: tpu_custom_call.1
= control target key start
LH: loop header
LB: loop body
LE: loop exit
PB: predicated region body
PF: predicated region fallthrough
CT: control target
= control target key end

     0   :  { %19 = vsyncpa [#allocation3], 0  ;;  %s3128_s0 = inlined_call_operand.vmem [shape: f32[8,2,3], index: 0, kind: input, shape index: {}]   ;;  %s3129_s1 = inlined_call_operand.vmem [shape: s32[8,2,2], index: 1, kind: input, shape index: {}]   ;;  %s3130_s2 = inlined_call_operand.vmem [shape: s32[8,2,1], index: 2, kind: input, shape index: {}]   ;;  %s3131_s3 = inlined_call_operand.hbm [shape: f32[16,32], index: 3, kind: input, shape index: {}]   ;;  %s3132_s4 = inlined_call_operand.hbm [shape: f32[16,32], index: 4, kind: input, shape index: {}]   ;;  %s3133_s5 = inlined_call_operand.hbm [shape: f32[3,32], index: 5, kind: input, shape index: {}]   ;;  %s3134_s6 = inlined_call_operand.vmem [shape: f32[1,32], index: 6, kind: input, shape index: {}]   ;;  %s3135_s7 = inlined_call_operand.vmem [shape: f32[32,128], index: 7, kind: input, shape index: {}]   ;;  %s3136_s8 = inlined_call_operand.vmem [shape: f32[32,128], index: 8, kind: input, shape index: {}]   ;;  %s3137_s9 = inlined_call_operand.hbm [shape: f32[1,128], index: 9, kind: input, shape index: {}]   ;;  %s3138_s10 = inlined_call_operand.vmem [shape: f32[32,128], index: 10, kind: input, shape index: {}]   ;;  %s3139_s11 = inlined_call_operand.vmem [shape: f32[1,128], index: 11, kind: input, shape index: {}]   ;;  %s3140_s12 = inlined_call_operand.hbm [shape: f32[2,32], index: 12, kind: output, shape index: {0}]   ;;  %s3141_s13 = inlined_call_operand.hbm [shape: f32[16,128], index: 13, kind: output, shape index: {1}]  }
   0x1   :  { %20 = vsyncpa [#allocation6], 0 }
   0x2   :  { %21 = vsyncpa [#allocation9], 0 }
   0x3   :  { %22 = vsyncpa [#allocation4], 0 }
   0x4   :  { %23 = vsyncpa [#allocation12], 0  ;;  %s2592_s25 = smov [#allocation5]   ;;  %s2593_s27 = smov [#allocation2]  }
   0x5   :  { %s47_s26 = sshll.u32 %s2592_s25, 4  ;;  %s35_s28 = sshll.u32 %s2593_s27, 4  ;;  %s48_s26 = int_to_ptr.vmem [resolvable:$true] %s47_s26  ;;  %s2680_s28 = int_to_ptr.vmem [resolvable:$true] %s35_s28 }
   0x6   :  { %s2450_s14 = scalar_lea.hbm %s3132_s4, 256 }
   0x7   :  { %p2451_p0 = scmp.ne.s32.totalorder %s3132_s4, %s2450_s14  ;;  %p2454_p1 = scmp.lt.u32.totalorder %s2450_s14, %s3132_s4 }
   0x9   :  { %p2456_p2 = pnand %p2454_p1, %p2451_p0 }
   0xb   :  { %2459 = shalt.err (!%p2456_p2)
}
   0xc   :  { %s2460_s19 = scalar_lea.vmem %s48_s26, 256  ;;  %p2465_p4 = scmp.lt.s32.totalorder %s48_s26, %s48_s26 }
   0xd   :  { %p2461_p3 = scmp.ne.s32.totalorder %s48_s26, %s2460_s19  ;;  %p2466_p5 = scmp.lt.s32.totalorder %s2460_s19, %s2460_s19 }
   0xf   :  { %p2467_p6 = por %p2466_p5, %p2465_p4 }
  0x11   :  { %p2468_p7 = pnand %p2467_p6, %p2461_p3 }
  0x13   :  { %2471 = shalt.err (!%p2468_p7)
}
  0x14   :  { %s2594_s20 = smov 128   ;;  %s2595_s21 = smov 8  }
  0x15   :  { %53 = dma.hbm_to_vmem [thread:$0]  %s3132_s4, 256, %s48_s26, [#allocation6], %s2594_s20, %s2594_s20, %s2595_s21  }
  0x16   :  { %s2472_s27 = scalar_lea.hbm %s3131_s3, 256 }
  0x17   :  { %p2473_p8 = scmp.ne.s32.totalorder %s3131_s3, %s2472_s27  ;;  %p2476_p9 = scmp.lt.u32.totalorder %s2472_s27, %s3131_s3 }
  0x19   :  { %p2478_p10 = pnand %p2476_p9, %p2473_p8 }
  0x1b   :  { %2481 = shalt.err (!%p2478_p10)
}
  0x1c   :  { %s2482_s16 = scalar_lea.vmem %s2680_s28, 256  ;;  %p2487_p12 = scmp.lt.s32.totalorder %s2680_s28, %s2680_s28 }
  0x1d   :  { %p2483_p11 = scmp.ne.s32.totalorder %s2680_s28, %s2482_s16  ;;  %p2488_p13 = scmp.lt.s32.totalorder %s2482_s16, %s2482_s16 }
  0x1f   :  { %p2489_p0 = por %p2488_p13, %p2487_p12 }
  0x21   :  { %p2490_p1 = pnand %p2489_p0, %p2483_p11 }
  0x23   :  { %2493 = shalt.err (!%p2490_p1)
}
  0x24   :  { %41 = dma.hbm_to_vmem [thread:$0]  %s3131_s3, 256, %s2680_s28, [#allocation3], %s2594_s20, %s2594_s20, %s2595_s21  }
  0x25   :  { %s2596_s17 = smov [#allocation7]   ;;  %s2597_s19 = smov [#allocation8]  }
  0x26   :  { %s60_s18 = sshll.u32 %s2596_s17, 4  ;;  %s76_s22 = sshll.u32 %s2597_s19, 4  ;;  %s61_s18 = int_to_ptr.vmem [resolvable:$true] %s60_s18  ;;  %s77_s22 = int_to_ptr.vmem [resolvable:$true] %s76_s22 }
  0x27   :  { %s2494_s25 = scalar_lea.hbm %s3133_s5, 64 }
  0x28   :  { %p2495_p2 = scmp.ne.s32.totalorder %s3133_s5, %s2494_s25  ;;  %p2498_p3 = scmp.lt.u32.totalorder %s2494_s25, %s3133_s5 }
  0x2a   :  { %p2500_p4 = pnand %p2498_p3, %p2495_p2 }
  0x2c   :  { %2503 = shalt.err (!%p2500_p4)
}
  0x2d   :  { %s2504_s3 = scalar_lea.vmem %s61_s18, 64  ;;  %p2509_p6 = scmp.lt.s32.totalorder %s61_s18, %s61_s18 }
  0x2e   :  { %p2505_p5 = scmp.ne.s32.totalorder %s61_s18, %s2504_s3  ;;  %p2510_p7 = scmp.lt.s32.totalorder %s2504_s3, %s2504_s3 }
  0x30   :  { %p2511_p8 = por %p2510_p7, %p2509_p6 }
  0x32   :  { %p2512_p9 = pnand %p2511_p8, %p2505_p5 }
  0x34   :  { %2515 = shalt.err (!%p2512_p9)
}
  0x35   :  { %63 = dma.hbm_to_vmem [thread:$0]  %s3133_s5, 64, %s61_s18, [#allocation6]  }
  0x36   :  { %s2516_s26 = scalar_lea.hbm %s3137_s9, 16 }
  0x37   :  { %p2517_p10 = scmp.ne.s32.totalorder %s3137_s9, %s2516_s26  ;;  %p2520_p11 = scmp.lt.u32.totalorder %s2516_s26, %s3137_s9 }
  0x39   :  { %p2522_p12 = pnand %p2520_p11, %p2517_p10 }
  0x3b   :  { %2525 = shalt.err (!%p2522_p12)
}
  0x3c   :  { %s2526_s25 = scalar_lea.vmem %s77_s22, 16  ;;  %s2530_s27 = scalar_lea.vmem %s77_s22, 32 }
  0x3d   :  { %p2527_p13 = scmp.ne.s32.totalorder %s77_s22, %s2526_s25  ;;  %p2531_p0 = scmp.lt.s32.totalorder %s77_s22, %s77_s22 }
  0x3e   :  { %p2532_p1 = scmp.lt.s32.totalorder %s2530_s27, %s2526_s25 }
  0x40   :  { %p2533_p2 = por %p2532_p1, %p2531_p0 }
  0x42   :  { %p2534_p3 = pnand %p2533_p2, %p2527_p13 }
  0x44   :  { %2537 = shalt.err (!%p2534_p3)
}
  0x45   :  { %79 = dma.hbm_to_vmem [thread:$0]  %s3137_s9, 16, %s77_s22, [#allocation9]  }
  0x46   :  { %2582 = dma.done.wait [#allocation3], 256  }
  0x47   :  { %2583 = vsyncadd [#allocation3], 4294967040 }
  0x48   :  { %2584 = dma.done.wait [#allocation6], 320  }
  0x49   :  { %2585 = vsyncadd [#allocation6], 4294966976 }
  0x4a   :  { %2586 = dma.done.wait [#allocation9], 16  }
  0x4b   :  { %2587 = vsyncadd [#allocation9], 4294967280  ;;  %v2598_v0 = vmov 0   ;;  %v106_v1 = vld [vmem:[%s3129_s1 + $0x4] sm:$0x3]  ;;  %v236_v10 = vld [vmem:[#allocation2 + $0x8] sm:$0xff]  ;;  %v113_v17 = vlaneseq }
  0x4c   :  { %2381 = vset.pattern.permute.xlu1 %v2598_v0  ;;  %2380 = vset.pattern.permute.xlu0 %v2598_v0  ;;  %v104_v2 = vld [vmem:[%s3129_s1] sm:$0x3]  ;;  %v107_v3 = vld [vmem:[%s3129_s1 + $0x6] sm:$0x3]  ;;  %v105_v4 = vld [vmem:[%s3129_s1 + $0x2] sm:$0x3] }
  0x4d   :  { %136 = vperm.xlu1 %2381, %v106_v1   ;;  %116 = vperm.xlu0 %2380, %v104_v2   ;;  %v109_v5 = vld [vmem:[%s3129_s1 + $0xa] sm:$0x3]  ;;  %v108_v6 = vld [vmem:[%s3129_s1 + $0x8] sm:$0x3]  ;;  %v111_v7 = vld [vmem:[%s3129_s1 + $0xe] sm:$0x3] }
  0x4e   :  { %v110_v8 = vld [vmem:[%s3129_s1 + $0xc] sm:$0x3]  ;;  %v235_v9 = vld [vmem:[#allocation2] sm:$0xff]  ;;  %v2599_v11 = vmov 1   ;;  %vm366_vm0 = vcmask 1042432   ;;  %v122_v23 = vshrl.u32 %v113_v17, 7 }
  0x4f   :  { %v2286_v12 = vpack.c.bf16 %v236_v10, %v235_v9  ;;  %v2767_v13 = vld [vmem:[#allocation7] sm:$0x7]  ;;  %v662_v15 = vld [vmem:[%s3135_s7 + $0x8] sm:$0xff]  ;;  %v2600_v18 = vmov 269488144   ;;  %v2787_v39 = vand.u32 127, %v113_v17 }
  0x50   :  { %v661_v14 = vld [vmem:[%s3135_s7] sm:$0xff]  ;;  %v119_v19 = vunpack.c.l.s4 %v2600_v18  ;;  %v2601_v20 = vmov 1983009808   ;;  %vm237_vm1 = vcmask 130048   ;;  %v2602_v56 = vmov 0.0   ;;  %v566_v9 = vld [vmem:[#allocation5 + $0x8] sm:$0xff] }
  0x51   :  { %146 = vperm.xlu1 %2381, %v107_v3   ;;  %126 = vperm.xlu0 %2380, %v105_v4   ;;  %v2294_v16 = vpack.c.bf16 %v662_v15, %v661_v14  ;;  %v198_v21 = vunpack.c.l.s4 %v2601_v20  ;;  %v96_v40 = vld [vmem:[%s3128_s0] sm:$0x3]  ;;  %v97_v45 = vld [vmem:[%s3128_s0 + $0x2] sm:$0x3]  ;;  %v98_v46 = vld [vmem:[%s3128_s0 + $0x4] sm:$0x3] }
  0x52   :  { %2287 = vmatprep.subr.bf16.mxu0 %v2286_v12  ;;  %v120_v22 = vunpack.c.0.s8 %v119_v19  ;;  %v99_v47 = vld [vmem:[%s3128_s0 + $0x6] sm:$0x3]  ;;  %v327_v51 = vcombine.low %v96_v40, %v97_v45  ;;  %v100_v59 = vld [vmem:[%s3128_s0 + $0x8] sm:$0x3]  ;;  %v101_v62 = vld [vmem:[%s3128_s0 + $0xa] sm:$0x3] }
  0x53   :  { %2289 = vmatpush3.bf16.msra.mxu0 %v2286_v12  ;;  %2295 = vmatprep.subr.bf16.mxu1 %v2294_v16  ;;  %v199_v24 = vunpack.c.0.s8 %v198_v21  ;;  %v328_v52 = vcombine.low %v98_v46, %v99_v47  ;;  %v102_v63 = vld [vmem:[%s3128_s0 + $0xc] sm:$0x3]  ;;  %vm361_vm4 = vcmask 23552   ;;  %v664_v46 = vld [vmem:[%s3135_s7 + $0x18] sm:$0xff]  ;;  %vm2604_vm7 = vmmov 0   ;;  %s2607_s26 = smov 96  }
  0x54   :  { %2164 = vmatprep.subr.msk.mxu0 %vm366_vm0, %v2767_v13  ;;  %2297 = vmatpush3.bf16.msra.mxu1 %v2294_v16  ;;  %v2779_v27 = vsub.s32 %v120_v22, %v122_v23  ;;  %vm672_vm8 = vcmask 261120  }
  0x55   :  { %166 = vperm.xlu1 %2381, %v109_v5   ;;  %156 = vperm.xlu0 %2380, %v108_v6   ;;  %v2781_v28 = vsub.s32 %v199_v24, %v122_v23 }
  0x57   :  { %v335_v60 = vrot.slane %v327_v51, %v2781_v28  ;;  %v342_v61 = vrot.slane %v328_v52, %v2781_v28  ;;  %v816_v51 = vld [vmem:[%s3136_s8 + $0x10] sm:$0xff]  ;;  %v817_v52 = vld [vmem:[%s3136_s8 + $0x18] sm:$0xff] }
  0x59   :  { %186 = vperm.xlu1 %2381, %v111_v7   ;;  %176 = vperm.xlu0 %2380, %v110_v8   ;;  %v343_v14 = vcombine.low %v335_v60, %v342_v61 }
  0x5d   :  { %2383 = vset.pattern.permute.xlu1 %v2599_v11  ;;  %2382 = vset.pattern.permute.xlu0 %v2599_v11  ;;  %v344_v11 = vcombine.low %v100_v59, %v101_v62  ;;  %v2073_v62 = vld [vmem:[#allocation8] ss:$0 sm:$0xff] }
  0x5e   :  { %456 = vperm.xlu1 %2383, %v105_v4   ;;  %446 = vperm.xlu0 %2382, %v104_v2  }
  0x5f   :  { %v352_v22 = vrot.slane %v344_v11, %v2781_v28 }
  0x62   :  { %466 = vperm.xlu1 %2383, %v106_v1   ;;  %476 = vperm.xlu0 %2382, %v107_v3   ;;  %v103_v1 = vld [vmem:[%s3128_s0 + $0xe] sm:$0x3] }
  0x63   :  { %v345_v12 = vcombine.low %v102_v63, %v103_v1 }
  0x65   :  { %v359_v23 = vrot.slane %v345_v12, %v2781_v28 }
  0x66   :  { %486 = vperm.xlu1 %2383, %v108_v6   ;;  %496 = vperm.xlu0 %2382, %v109_v5  }
  0x6a   :  { %506 = vperm.xlu1 %2383, %v110_v8   ;;  %516 = vperm.xlu0 %2382, %v111_v7   ;;  %v565_v8 = vld [vmem:[#allocation5] sm:$0xff] }
  0x6b   :  { %v2290_v17 = vpack.c.bf16 %v566_v9, %v565_v8 }
  0x6e   :  { %2384 = vset.pattern.permute.xlu0 %v2598_v0  ;;  %2385 = vset.pattern.permute.xlu1 %v2598_v0 }
  0xcc   :  { %v137_v25 = vpop.permute.xlu1 %136  ;;  %v117_v26 = vpop.permute.xlu0 %116 }
  0xcd   :  { %v144_v31 = vrot.slane %v137_v25, %v2779_v27  ;;  %v124_v32 = vrot.slane %v117_v26, %v2779_v27 }
  0xd0   :  { %v147_v29 = vpop.permute.xlu1 %146  ;;  %v127_v30 = vpop.permute.xlu0 %126 }
  0xd1   :  { %v154_v33 = vrot.slane %v147_v29, %v2779_v27  ;;  %v134_v34 = vrot.slane %v127_v30, %v2779_v27 }
  0xd3   :  { %v196_v35 = vcombine.low %v144_v31, %v154_v33  ;;  %v195_v36 = vcombine.low %v124_v32, %v134_v34  ;;  %v360_v33 = vcombine.low %v352_v22, %v359_v23 }
  0xd4   :  { %v167_v37 = vpop.permute.xlu1 %166  ;;  %v157_v38 = vpop.permute.xlu0 %156 }
  0xd5   :  { %v210_v41 = vrot.slane %v196_v35, %v2781_v28  ;;  %v203_v42 = vrot.slane %v195_v36, %v2781_v28  ;;  %v174_v43 = vrot.slane %v167_v37, %v2779_v27  ;;  %v164_v44 = vrot.slane %v157_v38, %v2779_v27 }
  0xd7   :  { %v211_v48 = vcombine.low %v203_v42, %v210_v41  ;;  %v212_v53 = vcombine.low %v164_v44, %v174_v43 }
  0xd8   :  { %v187_v49 = vpop.permute.xlu1 %186  ;;  %v177_v50 = vpop.permute.xlu0 %176 }
  0xd9   :  { %v194_v54 = vrot.slane %v187_v49, %v2779_v27  ;;  %v184_v55 = vrot.slane %v177_v50, %v2779_v27  ;;  %vm229_vm2 = vcmp.eq.s32.totalorder %v2787_v39, %v211_v48  ;;  %v220_v2 = vrot.slane %v212_v53, %v2781_v28  ;;  %v814_v48 = vld [vmem:[%s3136_s8] sm:$0xff] }
  0xda   :  { %v2061_v57 = vsel %vm229_vm2, 1.0, %v2602_v56  ;;  %v2603_v50 = vmov 0.0|0.0   ;;  %v2877_v53 = vpack.c.bf16 %v817_v52, %v816_v51 }
  0xdb   :  { %v213_v58 = vcombine.low %v184_v55, %v194_v54  ;;  %2161 = vmatprep.mubr.msk.f32.mxu0 %vm237_vm1, %v2061_v57  ;;  %v2072_v54 = vld [vmem:[%s3134_s6] ss:$0 sm:$0xff]  ;;  %s2605_s6 = smov 64  }
  0xdd   :  { %v227_v3 = vrot.slane %v213_v58, %v2781_v28  ;;  %v457_v4 = vpop.permute.xlu1 %456  ;;  %v447_v5 = vpop.permute.xlu0 %446 }
  0xde   :  { %v464_v6 = vrot.slane %v457_v4, %v2779_v27  ;;  %v454_v7 = vrot.slane %v447_v5, %v2779_v27 }
  0xdf   :  { %v228_v10 = vcombine.low %v220_v2, %v227_v3 }
  0xe0   :  { %v525_v18 = vcombine.low %v454_v7, %v464_v6 }
  0xe1   :  { %v467_v15 = vpop.permute.xlu1 %466  ;;  %v477_v16 = vpop.permute.xlu0 %476  ;;  %vm230_vm3 = vcmp.eq.s32.totalorder %v2787_v39, %v228_v10 }
  0xe2   :  { %v474_v19 = vrot.slane %v467_v15, %v2779_v27  ;;  %v484_v20 = vrot.slane %v477_v16, %v2779_v27  ;;  %v2062_v21 = vsel %vm230_vm3, 1.0, %v2602_v56  ;;  %v533_v29 = vrot.slane %v525_v18, %v2781_v28  ;;  %v798_v16 = vld [vmem:[%s3130_s2] sm:$0x3] }
  0xe3   :  { %2162 = vmatmul.mubr.msk.f32.vlgmr.msra.gmra.mrb[0].mxu0 %vm237_vm1, %v2062_v21  ;;  %vm806_vm9 = vcmp.ne.s32.totalorder %v798_v16, 0 }
  0xe4   :  { %v526_v24 = vcombine.low %v474_v19, %v484_v20  ;;  %2165 = vmatpush3.msk.msra.mxu0 %vm366_vm0, %v2767_v13  ;;  %2166 = vmatprep.mubr.msk.f32.mxu0 %vm361_vm4, %v343_v14 }
  0xe5   :  { %v487_v25 = vpop.permute.xlu1 %486  ;;  %v497_v26 = vpop.permute.xlu0 %496  ;;  %2291 = vmatprep.subr.bf16.mxu0 %v2290_v17 }
  0xe6   :  { %v540_v30 = vrot.slane %v526_v24, %v2781_v28  ;;  %v494_v31 = vrot.slane %v487_v25, %v2779_v27  ;;  %v504_v32 = vrot.slane %v497_v26, %v2779_v27 }
  0xe8   :  { %v541_v34 = vcombine.low %v533_v29, %v540_v30  ;;  %v542_v37 = vcombine.low %v494_v31, %v504_v32 }
  0xe9   :  { %v507_v35 = vpop.permute.xlu1 %506  ;;  %v517_v36 = vpop.permute.xlu0 %516 }
  0xea   :  { %v514_v13 = vrot.slane %v507_v35, %v2779_v27  ;;  %v524_v38 = vrot.slane %v517_v36, %v2779_v27  ;;  %vm559_vm5 = vcmp.eq.s32.totalorder %v2787_v39, %v541_v34  ;;  %v550_v42 = vrot.slane %v542_v37, %v2781_v28  ;;  %v663_v27 = vld [vmem:[%s3135_s7 + $0x10] sm:$0xff] }
  0xeb   :  { %2167 = vmatmul.mubr.msk.f32.vlgmr.msra.gmra.mrb[0].mxu0 %vm361_vm4, %v360_v33  ;;  %v2068_v40 = vsel %vm559_vm5, 1.0, %v2602_v56  ;;  %v2298_v47 = vpack.c.bf16 %v664_v46, %v663_v27 }
  0xec   :  { %v543_v41 = vcombine.low %v514_v13, %v524_v38  ;;  %2293 = vmatpush3.bf16.msra.mxu0 %v2290_v17  ;;  %2173 = vmatprep.mubr.msk.f32.mxu0 %vm237_vm1, %v2068_v40  ;;  %v916_v17 = vsel %vm806_vm9, 1, %v2598_v0  ;;  %vm1899_vm9 = vcmask 254976  }
  0xed   :  { %2299 = vmatprep.subr.bf16.mxu1 %v2298_v47  ;;  %2308 = vmatprep.subr.bf16.mxu0 %v2603_v50 }
  0xee   :  { %v557_v43 = vrot.slane %v543_v41, %v2781_v28  ;;  %2301 = vmatpush3.bf16.msra.mxu1 %v2298_v47 }
  0xef   :  { %2302 = vmatprep.subr.bf16.mxu1 %v2603_v50 }
  0xf0   :  { %v558_v44 = vcombine.low %v550_v42, %v557_v43  ;;  %v799_v42 = vld [vmem:[%s3130_s2 + $0x2] sm:$0x3] }
  0xf1   :  { %vm807_vm11 = vcmp.ne.s32.totalorder %v799_v42, 0 }
  0xf2   :  { %vm560_vm6 = vcmp.eq.s32.totalorder %v2787_v39, %v558_v44  ;;  %v815_v39 = vld [vmem:[%s3136_s8 + $0x8] sm:$0xff]  ;;  %s2606_s8 = smov 32   ;;  %v1054_v27 = vsel %vm807_vm11, 1, %v2598_v0 }
  0xf3   :  { %v2069_v45 = vsel %vm560_vm6, 1.0, %v2602_v56  ;;  %v2865_v49 = vpack.c.bf16 %v815_v39, %v814_v48 }
  0xf4   :  { %2174 = vmatmul.mubr.msk.f32.vlgmr.msra.gmra.mrb[0].mxu0 %vm237_vm1, %v2069_v45 }
  0xf5   :  { %2310 = vmatpush3.bf16.msra.mxu0 %v2865_v49  ;;  %2206 = vmatprep.mubr.msk.f32.mxu0 %vm2604_vm7, %v2602_v56 }
  0xf6   :  { %2311 = vmatprep.subr.bf16.mxu0 %v2603_v50 }
  0xf9   :  { %2313 = vmatpush3.bf16.msra.mxu0 %v2877_v53 }
  0xfa   :  { %2320 = vmatprep.subr.bf16.mxu0 %v2603_v50 }
 0x1c7   :  { %v2175_v55 = vpop.f32.mrb[0].mxu0 }
 0x1c8   :  { %v658_v57 = vadd.f32 %v2175_v55, %v2072_v54  ;;  %v639_v58 = vpop.f32.mrb[1].mxu0 }
 0x1c9   :  { %v657_v59 = vadd.f32 %v2072_v54, %v639_v58 }
 0x1ca   :  { %v660_v61 = vmax.f32 %v658_v57, 0.0 }
 0x1cb   :  { %v659_v60 = vmax.f32 %v657_v59, 0.0 }
 0x1cd   :  { %2184 = vmatprep.mubr.msk.f32.mxu1 %vm672_vm8, %v659_v60 }
 0x1ce   :  { %2185 = vmatmul.mubr.msk.f32.vlgmr.msra.gmra.mrb[0].mxu1 %vm672_vm8, %v660_v61 }
 0x1cf   :  { %2304 = vmatpush3.bf16.msra.mxu1 %v2865_v49  ;;  %2195 = vmatprep.mubr.msk.f32.mxu1 %vm2604_vm7, %v2602_v56 }
 0x1d0   :  { %2305 = vmatprep.subr.bf16.mxu1 %v2603_v50 }
 0x1d3   :  { %2307 = vmatpush3.bf16.msra.mxu1 %v2877_v53 }
 0x1d4   :  { %2314 = vmatprep.subr.bf16.mxu1 %v2603_v50 }
 0x1d6   :  { %2196 = vmatmul.mubr.f32.vlgmr.msra.gmra.mrb[2].mxu1 %v2602_v56 }
 0x1d7   :  { %2316 = vmatpush3.bf16.msra.mxu1 %v2865_v49  ;;  %2217 = vmatprep.mubr.msk.f32.mxu1 %vm2604_vm7, %v2602_v56 }
 0x1d8   :  { %2317 = vmatprep.subr.bf16.mxu1 %v2603_v50 }
 0x1db   :  { %2319 = vmatpush3.bf16.msra.mxu1 %v2877_v53 }
 0x1dc   :  { %2326 = vmatprep.subr.bf16.mxu1 %v2603_v50 }
 0x2a1   :  { %v2186_v63 = vpop.f32.mrb[0].mxu1 }
 0x2a2   :  { %v2901_v1 = vadd.f32 %v2186_v63, %v2073_v62  ;;  %v745_v2 = vpop.f32.mrb[1].mxu1 }
 0x2a3   :  { %v2903_v3 = vadd.f32 %v2073_v62, %v745_v2 }
 0x2a5   :  { %v763_v4 = vrot.slane %v2903_v3, %v2781_v28  ;;  %v756_v2 = vcombine.high %v2903_v3, %v2903_v3 }
 0x2a7   :  { %v771_v34 = vcombine.high %v763_v4, %v763_v4 }
 0x2a9   :  { %v887_v5 = vpop.f32.mrb[2].mxu1 }
 0x2aa   :  { %v891_v6 = vadd.f32 %v887_v5, %v763_v4  ;;  %v2197_v7 = vpop.f32.mrb[3].mxu1  ;;  %v770_v4 = vrot.slane %v756_v2, %v2781_v28 }
 0x2ac   :  { %2386 = vtanh.f32 %v891_v6  ;;  %v2076_v9 = vmul.f32 -1.442695, %v891_v6 }
 0x2ae   :  { %2388 = vpow2.f32 %v2076_v9 }
 0x2b6   :  { %v2387_v8 = vpop.eup %2386 }
 0x2b7   :  { %901 = vrot.lane.b32.xlu1 %v2387_v8, %s2605_s6 }
 0x2b8   :  { %v2389_v10 = vpop.eup %2388 }
 0x2b9   :  { %v895_v11 = vadd.f32 1.0, %v2389_v10 }
 0x2bb   :  { %2390 = vrcp.f32 %v895_v11 }
 0x2c5   :  { %v2391_v12 = vpop.eup %2390 }
 0x2c6   :  { %v899_v18 = vmul.f32 0.0, %v2391_v12 }
 0x329   :  { %v902_v14 = vpop.permute.xlu1 %901 }
 0x32a   :  { %v904_v15 = vmul.f32 %v2391_v12, %v902_v14 }
 0x32c   :  { %906 = vrot.lane.b32.xlu0 %v904_v15, %s2606_s8 }
 0x330   :  { %918 = vperm.xlu0 %2384, %v916_v17  }
 0x39e   :  { %v907_v19 = vpop.permute.xlu0 %906 }
 0x39f   :  { %v909_v20 = vadd.f32 %v907_v19, %v899_v18 }
 0x3a1   :  { %2392 = vtanh.f32 %v909_v20  ;;  %v940_v25 = vrot.slane %v909_v20, %v2781_v28 }
 0x3ab   :  { %v2393_v21 = vpop.eup %2392 }
 0x3ac   :  { %912 = vrot.lane.b32.xlu1 %v2393_v21, %s2605_s6 }
 0x3af   :  { %v919_v26 = vpop.permute.xlu0 %918 }
 0x3b0   :  { %vm920_vm10 = vcmp.eq.s32.totalorder %v919_v26, 1 }
 0x41e   :  { %v913_v22 = vpop.permute.xlu1 %912 }
 0x41f   :  { %v915_v23 = vmul.f32 %v2391_v12, %v913_v22  ;;  %v800_v12 = vld [vmem:[%s3130_s2 + $0x4] sm:$0x3] }
 0x420   :  { %vm808_vm13 = vcmp.ne.s32.totalorder %v800_v12, 0 }
 0x421   :  { %v928_v24 = vrot.slane %v915_v23, %v2781_v28  ;;  %v1192_v16 = vsel %vm808_vm13, 1, %v2598_v0 }
 0x423   :  { %929 = vrot.lane.b32.xlu1 %v928_v24, %s2606_s8 }
 0x427   :  { %941 = vrot.lane.b32.xlu1 %v940_v25, %s2607_s26 }
 0x495   :  { %v930_v29 = vpop.permute.xlu1 %929 }
 0x496   :  { %v2918_v30 = vsel %vm920_vm10, %v930_v29, 0.0 }
 0x497   :  { %2207 = vmatmul.mubr.msk.f32.vlgmr.msra.gmra.mrb[2].mxu0 %vm672_vm8, %v2918_v30 }
 0x498   :  { %2322 = vmatpush3.bf16.msra.mxu0 %v2865_v49  ;;  %2228 = vmatprep.mubr.msk.f32.mxu0 %vm2604_vm7, %v2602_v56 }
 0x499   :  { %v942_v31 = vpop.permute.xlu1 %941  ;;  %2323 = vmatprep.subr.bf16.mxu0 %v2603_v50 }
 0x49a   :  { %v944_v32 = vsel %vm920_vm10, %v942_v31, 0.0 }
 0x49b   :  { %v1033_v33 = vrot.slane %v944_v32, %v2781_v28 }
 0x49c   :  { %2325 = vmatpush3.bf16.msra.mxu0 %v2877_v53 }
 0x49d   :  { %1034 = vrot.lane.b32.xlu1 %v1033_v33, %s2606_s8  ;;  %2332 = vmatprep.subr.bf16.mxu0 %v2603_v50 }
 0x50f   :  { %v1035_v46 = vpop.permute.xlu1 %1034 }
 0x56a   :  { %v1014_v35 = vpop.f32.mrb[2].mxu0 }
 0x56b   :  { %v1018_v36 = vadd.f32 %v1014_v35, %v771_v34  ;;  %v2208_v37 = vpop.f32.mrb[3].mxu0  ;;  %v772_v35 = vcombine.high %v770_v4, %v770_v4 }
 0x56d   :  { %2394 = vtanh.f32 %v1018_v36  ;;  %v2078_v38 = vmul.f32 -1.442695, %v1018_v36 }
 0x56f   :  { %2396 = vpow2.f32 %v2078_v38 }
 0x577   :  { %v2395_v13 = vpop.eup %2394 }
 0x578   :  { %1039 = vrot.lane.b32.xlu0 %v2395_v13, %s2605_s6 }
 0x579   :  { %v2397_v40 = vpop.eup %2396 }
 0x57a   :  { %v1022_v41 = vadd.f32 1.0, %v2397_v40 }
 0x57c   :  { %2398 = vrcp.f32 %v1022_v41 }
 0x586   :  { %v2399_v43 = vpop.eup %2398 }
 0x587   :  { %v1037_v47 = vmul.f32 %v2399_v43, %v1035_v46 }
 0x5ea   :  { %v1040_v44 = vpop.permute.xlu0 %1039 }
 0x5eb   :  { %v1042_v45 = vmul.f32 %v2399_v43, %v1040_v44 }
 0x5ed   :  { %1044 = vrot.lane.b32.xlu0 %v1042_v45, %s2606_s8 }
 0x5f1   :  { %1056 = vperm.xlu0 %2384, %v1054_v27  }
 0x65f   :  { %v1045_v48 = vpop.permute.xlu0 %1044 }
 0x660   :  { %v1047_v39 = vadd.f32 %v1045_v48, %v1037_v47 }
 0x662   :  { %2400 = vtanh.f32 %v1047_v39  ;;  %v1078_v51 = vrot.slane %v1047_v39, %v2781_v28 }
 0x664   :  { %1079 = vrot.lane.b32.xlu0 %v1078_v51, %s2607_s26 }
 0x66c   :  { %v2401_v52 = vpop.eup %2400 }
 0x66d   :  { %1050 = vrot.lane.b32.xlu1 %v2401_v52, %s2605_s6 }
 0x670   :  { %v1057_v54 = vpop.permute.xlu0 %1056 }
 0x671   :  { %vm1058_vm12 = vcmp.eq.s32.totalorder %v1057_v54, 1 }
 0x6d6   :  { %v1080_v55 = vpop.permute.xlu0 %1079 }
 0x6d7   :  { %v1082_v57 = vsel %vm1058_vm12, %v1080_v55, %v944_v32 }
 0x6d8   :  { %v1171_v58 = vrot.slane %v1082_v57, %v2781_v28 }
 0x6da   :  { %1172 = vrot.lane.b32.xlu0 %v1171_v58, %s2606_s8 }
 0x6df   :  { %v1051_v59 = vpop.permute.xlu1 %1050 }
 0x6e0   :  { %v1053_v60 = vmul.f32 %v2399_v43, %v1051_v59  ;;  %v801_v43 = vld [vmem:[%s3130_s2 + $0x6] sm:$0x3] }
 0x6e1   :  { %vm809_vm15 = vcmp.ne.s32.totalorder %v801_v43, 0 }
 0x6e2   :  { %v1066_v61 = vrot.slane %v1053_v60, %v2781_v28  ;;  %v1330_v46 = vsel %vm809_vm15, 1, %v2598_v0 }
 0x6e4   :  { %1067 = vrot.lane.b32.xlu1 %v1066_v61, %s2606_s8 }
 0x74c   :  { %v1173_v17 = vpop.permute.xlu0 %1172 }
 0x756   :  { %v1068_v62 = vpop.permute.xlu1 %1067 }
 0x757   :  { %v2944_v63 = vsel %vm1058_vm12, %v1068_v62, %v2918_v30 }
 0x758   :  { %2218 = vmatmul.mubr.msk.f32.vlgmr.msra.gmra.mrb[4].mxu1 %vm672_vm8, %v2944_v63 }
 0x759   :  { %2328 = vmatpush3.bf16.msra.mxu1 %v2865_v49  ;;  %2239 = vmatprep.mubr.msk.f32.mxu1 %vm2604_vm7, %v2602_v56 }
 0x75a   :  { %2329 = vmatprep.subr.bf16.mxu1 %v2603_v50 }
 0x75d   :  { %2331 = vmatpush3.bf16.msra.mxu1 %v2877_v53 }
 0x75e   :  { %2338 = vmatprep.subr.bf16.mxu1 %v2603_v50 }
 0x82b   :  { %v1152_v5 = vpop.f32.mrb[4].mxu1 }
 0x82c   :  { %v1156_v6 = vadd.f32 %v1152_v5, %v770_v4  ;;  %v2219_v7 = vpop.f32.mrb[5].mxu1  ;;  %v780_v5 = vrot.slane %v2901_v1, %v2781_v28 }
 0x82e   :  { %2402 = vtanh.f32 %v1156_v6  ;;  %v2080_v9 = vmul.f32 -1.442695, %v1156_v6 }
 0x830   :  { %2404 = vpow2.f32 %v2080_v9 }
 0x838   :  { %v2403_v8 = vpop.eup %2402 }
 0x839   :  { %1177 = vrot.lane.b32.xlu1 %v2403_v8, %s2605_s6 }
 0x83a   :  { %v2405_v10 = vpop.eup %2404 }
 0x83b   :  { %v1160_v11 = vadd.f32 1.0, %v2405_v10 }
 0x83d   :  { %2406 = vrcp.f32 %v1160_v11 }
 0x847   :  { %v2407_v14 = vpop.eup %2406 }
 0x848   :  { %v1175_v18 = vmul.f32 %v2407_v14, %v1173_v17 }
 0x8ab   :  { %v1178_v3 = vpop.permute.xlu1 %1177 }
 0x8ac   :  { %v1180_v15 = vmul.f32 %v2407_v14, %v1178_v3 }
 0x8ae   :  { %1182 = vrot.lane.b32.xlu1 %v1180_v15, %s2606_s8 }
 0x8b2   :  { %1194 = vperm.xlu1 %2385, %v1192_v16  }
 0x920   :  { %v1183_v19 = vpop.permute.xlu1 %1182 }
 0x921   :  { %v1185_v20 = vadd.f32 %v1183_v19, %v1175_v18 }
 0x923   :  { %2408 = vtanh.f32 %v1185_v20  ;;  %v1216_v21 = vrot.slane %v1185_v20, %v2781_v28 }
 0x925   :  { %1217 = vrot.lane.b32.xlu1 %v1216_v21, %s2607_s26 }
 0x92d   :  { %v2409_v22 = vpop.eup %2408 }
 0x92e   :  { %1188 = vrot.lane.b32.xlu0 %v2409_v22, %s2605_s6 }
 0x931   :  { %v1195_v23 = vpop.permute.xlu1 %1194 }
 0x932   :  { %vm1196_vm14 = vcmp.eq.s32.totalorder %v1195_v23, 1 }
 0x997   :  { %v1218_v24 = vpop.permute.xlu1 %1217 }
 0x998   :  { %v1220_v25 = vsel %vm1196_vm14, %v1218_v24, %v1082_v57 }
 0x999   :  { %v1309_v26 = vrot.slane %v1220_v25, %v2781_v28 }
 0x99b   :  { %1310 = vrot.lane.b32.xlu1 %v1309_v26, %s2606_s8 }
 0x9a0   :  { %v1189_v29 = vpop.permute.xlu0 %1188 }
 0x9a1   :  { %v1191_v31 = vmul.f32 %v2407_v14, %v1189_v29  ;;  %v802_v14 = vld [vmem:[%s3130_s2 + $0x8] sm:$0x3] }
 0x9a2   :  { %vm810_vm1 = vcmp.ne.s32.totalorder %v802_v14, 0 }
 0x9a3   :  { %v1204_v32 = vrot.slane %v1191_v31, %v2781_v28  ;;  %v1468_v17 = vsel %vm810_vm1, 1, %v2598_v0 }
 0x9a5   :  { %1205 = vrot.lane.b32.xlu0 %v1204_v32, %s2606_s8 }
 0xa0d   :  { %v1311_v47 = vpop.permute.xlu1 %1310 }
 0xa17   :  { %v1206_v33 = vpop.permute.xlu0 %1205 }
 0xa18   :  { %v2971_v34 = vsel %vm1196_vm14, %v1206_v33, %v2944_v63 }
 0xa19   :  { %2229 = vmatmul.mubr.msk.f32.vlgmr.msra.gmra.mrb[4].mxu0 %vm672_vm8, %v2971_v34 }
 0xa1a   :  { %2334 = vmatpush3.bf16.msra.mxu0 %v2865_v49  ;;  %2250 = vmatprep.mubr.msk.f32.mxu0 %vm2604_vm7, %v2602_v56 }
 0xa1b   :  { %2335 = vmatprep.subr.bf16.mxu0 %v2603_v50 }
 0xa1e   :  { %2337 = vmatpush3.bf16.msra.mxu0 %v2877_v53 }
 0xa1f   :  { %2344 = vmatprep.subr.bf16.mxu0 %v2603_v50 }
 0xaec   :  { %v1290_v36 = vpop.f32.mrb[4].mxu0 }
 0xaed   :  { %v1294_v37 = vadd.f32 %v1290_v36, %v772_v35  ;;  %v2230_v13 = vpop.f32.mrb[5].mxu0 }
 0xaef   :  { %2410 = vtanh.f32 %v1294_v37  ;;  %v2082_v40 = vmul.f32 -1.442695, %v1294_v37  ;;  %v788_v37 = vcombine.high %v780_v5, %v780_v5 }
 0xaf1   :  { %2412 = vpow2.f32 %v2082_v40 }
 0xaf9   :  { %v2411_v38 = vpop.eup %2410 }
 0xafa   :  { %1315 = vrot.lane.b32.xlu0 %v2411_v38, %s2605_s6 }
 0xafb   :  { %v2413_v41 = vpop.eup %2412 }
 0xafc   :  { %v1298_v42 = vadd.f32 1.0, %v2413_v41 }
 0xafe   :  { %2414 = vrcp.f32 %v1298_v42 }
 0xb08   :  { %v2415_v44 = vpop.eup %2414 }
 0xb09   :  { %v1313_v48 = vmul.f32 %v2415_v44, %v1311_v47 }
 0xb6c   :  { %v1316_v45 = vpop.permute.xlu0 %1315 }
 0xb6d   :  { %v1318_v27 = vmul.f32 %v2415_v44, %v1316_v45 }
 0xb6f   :  { %1320 = vrot.lane.b32.xlu0 %v1318_v27, %s2606_s8 }
 0xb73   :  { %1332 = vperm.xlu0 %2384, %v1330_v46  }
 0xbe1   :  { %v1321_v39 = vpop.permute.xlu0 %1320 }
 0xbe2   :  { %v1323_v51 = vadd.f32 %v1321_v39, %v1313_v48 }
 0xbe4   :  { %2416 = vtanh.f32 %v1323_v51  ;;  %v1354_v52 = vrot.slane %v1323_v51, %v2781_v28 }
 0xbe6   :  { %1355 = vrot.lane.b32.xlu0 %v1354_v52, %s2607_s26 }
 0xbee   :  { %v2417_v54 = vpop.eup %2416 }
 0xbef   :  { %1326 = vrot.lane.b32.xlu1 %v2417_v54, %s2605_s6 }
 0xbf2   :  { %v1333_v55 = vpop.permute.xlu0 %1332 }
 0xbf3   :  { %vm1334_vm0 = vcmp.eq.s32.totalorder %v1333_v55, 1 }
 0xc58   :  { %v1356_v57 = vpop.permute.xlu0 %1355 }
 0xc59   :  { %v1358_v58 = vsel %vm1334_vm0, %v1356_v57, %v1220_v25 }
 0xc5a   :  { %v1447_v59 = vrot.slane %v1358_v58, %v2781_v28 }
 0xc5c   :  { %1448 = vrot.lane.b32.xlu0 %v1447_v59, %s2606_s8 }
 0xc61   :  { %v1327_v60 = vpop.permute.xlu1 %1326 }
 0xc62   :  { %v1329_v61 = vmul.f32 %v2415_v44, %v1327_v60 }
 0xc64   :  { %v1342_v62 = vrot.slane %v1329_v61, %v2781_v28 }
 0xc66   :  { %1343 = vrot.lane.b32.xlu1 %v1342_v62, %s2606_s8  ;;  %v1913_v62 = vcombine.low %v2918_v30, %v2944_v63 }
 0xcce   :  { %v1449_v18 = vpop.permute.xlu0 %1448 }
 0xcd8   :  { %v1344_v2 = vpop.permute.xlu1 %1343 }
 0xcd9   :  { %v2995_v4 = vsel %vm1334_vm0, %v1344_v2, %v2971_v34 }
 0xcda   :  { %2240 = vmatmul.mubr.msk.f32.vlgmr.msra.gmra.mrb[6].mxu1 %vm672_vm8, %v2995_v4  ;;  %v1914_v61 = vcombine.low %v2971_v34, %v2995_v4  ;;  %v773_v34 = vcombine.high %v2901_v1, %v2901_v1 }
 0xcdb   :  { %2340 = vmatpush3.bf16.msra.mxu1 %v2865_v49  ;;  %2261 = vmatprep.mubr.msk.f32.mxu1 %vm2604_vm7, %v2602_v56 }
 0xcdc   :  { %2341 = vmatprep.subr.bf16.mxu1 %v2603_v50  ;;  %v1928_v2 = vrot.slane %v1914_v61, %v2781_v28 }
 0xcdf   :  { %2343 = vmatpush3.bf16.msra.mxu1 %v2877_v53 }
 0xdad   :  { %v1428_v6 = vpop.f32.mrb[6].mxu1 }
 0xdae   :  { %v1432_v7 = vadd.f32 %v1428_v6, %v780_v5  ;;  %v2241_v8 = vpop.f32.mrb[7].mxu1  ;;  %v1921_v5 = vrot.slane %v1913_v62, %v2781_v28 }
 0xdb0   :  { %2418 = vtanh.f32 %v1432_v7  ;;  %v2084_v10 = vmul.f32 -1.442695, %v1432_v7  ;;  %v1929_v8 = vcombine.low %v1921_v5, %v1928_v2 }
 0xdb2   :  { %2420 = vpow2.f32 %v2084_v10 }
 0xdba   :  { %v2419_v9 = vpop.eup %2418 }
 0xdbb   :  { %1453 = vrot.lane.b32.xlu1 %v2419_v9, %s2605_s6 }
 0xdbc   :  { %v2421_v11 = vpop.eup %2420 }
 0xdbd   :  { %v1436_v12 = vadd.f32 1.0, %v2421_v11 }
 0xdbf   :  { %2422 = vrcp.f32 %v1436_v12 }
 0xdc9   :  { %v2423_v3 = vpop.eup %2422 }
 0xdca   :  { %v1451_v19 = vmul.f32 %v2423_v3, %v1449_v18 }
 0xe2d   :  { %v1454_v15 = vpop.permute.xlu1 %1453 }
 0xe2e   :  { %v1456_v16 = vmul.f32 %v2423_v3, %v1454_v15 }
 0xe30   :  { %1458 = vrot.lane.b32.xlu1 %v1456_v16, %s2606_s8 }
 0xe34   :  { %1470 = vperm.xlu1 %2385, %v1468_v17  }
 0xea2   :  { %v1459_v20 = vpop.permute.xlu1 %1458 }
 0xea3   :  { %v1461_v21 = vadd.f32 %v1459_v20, %v1451_v19 }
 0xea5   :  { %2424 = vtanh.f32 %v1461_v21  ;;  %v1492_v22 = vrot.slane %v1461_v21, %v2781_v28 }
 0xea7   :  { %1493 = vrot.lane.b32.xlu1 %v1492_v22, %s2607_s26 }
 0xeaf   :  { %v2425_v23 = vpop.eup %2424 }
 0xeb0   :  { %1464 = vrot.lane.b32.xlu0 %v2425_v23, %s2605_s6 }
 0xeb3   :  { %v1471_v24 = vpop.permute.xlu1 %1470 }
 0xeb4   :  { %vm1472_vm2 = vcmp.eq.s32.totalorder %v1471_v24, 1 }
 0xf19   :  { %v1494_v25 = vpop.permute.xlu1 %1493 }
 0xf1a   :  { %v1496_v26 = vsel %vm1472_vm2, %v1494_v25, %v1358_v58 }
 0xf1b   :  { %v1585_v29 = vrot.slane %v1496_v26, %v2781_v28 }
 0xf1d   :  { %1586 = vrot.lane.b32.xlu1 %v1585_v29, %s2606_s8 }
 0xf22   :  { %v1465_v31 = vpop.permute.xlu0 %1464 }
 0xf23   :  { %v1467_v32 = vmul.f32 %v2423_v3, %v1465_v31  ;;  %v804_v3 = vld [vmem:[%s3130_s2 + $0xc] sm:$0x3] }
 0xf24   :  { %vm812_vm5 = vcmp.ne.s32.totalorder %v804_v3, 0 }
 0xf25   :  { %v1480_v33 = vrot.slane %v1467_v32, %v2781_v28  ;;  %v1744_v17 = vsel %vm812_vm5, 1, %v2598_v0 }
 0xf27   :  { %1481 = vrot.lane.b32.xlu0 %v1480_v33, %s2606_s8 }
 0xf8f   :  { %v1587_v27 = vpop.permute.xlu1 %1586 }
 0xf99   :  { %v1482_v35 = vpop.permute.xlu0 %1481 }
 0xf9a   :  { %v3020_v36 = vsel %vm1472_vm2, %v1482_v35, %v2995_v4  ;;  %v787_v4 = vrot.slane %v773_v34, %v2781_v28 }
 0xf9b   :  { %2251 = vmatmul.mubr.msk.f32.vlgmr.msra.gmra.mrb[6].mxu0 %vm672_vm8, %v3020_v36 }
 0xf9c   :  { %2346 = vmatpush3.bf16.msra.mxu0 %v2865_v49  ;;  %2272 = vmatprep.mubr.msk.f32.mxu0 %vm2604_vm7, %v2602_v56  ;;  %v803_v56 = vld [vmem:[%s3130_s2 + $0xa] sm:$0x3] }
 0xf9d   :  { %2347 = vmatprep.subr.bf16.mxu0 %v2603_v50  ;;  %vm811_vm3 = vcmp.ne.s32.totalorder %v803_v56, 0 }
 0xf9e   :  { %v1606_v45 = vsel %vm811_vm3, 1, %v2598_v0 }
 0xfa0   :  { %2349 = vmatpush3.bf16.msra.mxu0 %v2877_v53 }
0x106e   :  { %v1566_v13 = vpop.f32.mrb[6].mxu0 }
0x106f   :  { %v1570_v38 = vadd.f32 %v1566_v13, %v788_v37  ;;  %v2252_v40 = vpop.f32.mrb[7].mxu0  ;;  %v789_v13 = vcombine.high %v787_v4, %v787_v4 }
0x1071   :  { %2426 = vtanh.f32 %v1570_v38  ;;  %v2086_v42 = vmul.f32 -1.442695, %v1570_v38 }
0x1073   :  { %2428 = vpow2.f32 %v2086_v42 }
0x107b   :  { %v2427_v41 = vpop.eup %2426 }
0x107c   :  { %1591 = vrot.lane.b32.xlu0 %v2427_v41, %s2605_s6 }
0x107d   :  { %v2429_v43 = vpop.eup %2428 }
0x107e   :  { %v1574_v44 = vadd.f32 1.0, %v2429_v43 }
0x1080   :  { %2430 = vrcp.f32 %v1574_v44 }
0x108a   :  { %v2431_v49 = vpop.eup %2430 }
0x108b   :  { %v1589_v46 = vmul.f32 %v2431_v49, %v1587_v27 }
0x10ee   :  { %v1592_v50 = vpop.permute.xlu0 %1591 }
0x10ef   :  { %v1594_v53 = vmul.f32 %v2431_v49, %v1592_v50 }
0x10f1   :  { %1596 = vrot.lane.b32.xlu0 %v1594_v53, %s2606_s8 }
0x10f5   :  { %1608 = vperm.xlu0 %2384, %v1606_v45  }
0x1163   :  { %v1597_v47 = vpop.permute.xlu0 %1596 }
0x1164   :  { %v1599_v48 = vadd.f32 %v1597_v47, %v1589_v46 }
0x1166   :  { %2432 = vtanh.f32 %v1599_v48  ;;  %v1630_v39 = vrot.slane %v1599_v48, %v2781_v28 }
0x1168   :  { %1631 = vrot.lane.b32.xlu0 %v1630_v39, %s2607_s26 }
0x1170   :  { %v2433_v51 = vpop.eup %2432 }
0x1171   :  { %1602 = vrot.lane.b32.xlu1 %v2433_v51, %s2605_s6  ;;  %v1901_v51 = vld [vmem:[%s3138_s10] sm:$0xff] }
0x1174   :  { %v1609_v52 = vpop.permute.xlu0 %1608 }
0x1175   :  { %vm1610_vm4 = vcmp.eq.s32.totalorder %v1609_v52, 1  ;;  %v1902_v52 = vld [vmem:[%s3138_s10 + $0x8] sm:$0xff] }
0x11da   :  { %v1632_v54 = vpop.permute.xlu0 %1631 }
0x11db   :  { %v1634_v55 = vsel %vm1610_vm4, %v1632_v54, %v1496_v26  ;;  %v2350_v54 = vpack.c.bf16 %v1902_v52, %v1901_v51 }
0x11dc   :  { %v1723_v57 = vrot.slane %v1634_v55, %v2781_v28 }
0x11dd   :  { %2351 = vmatprep.subr.bf16.mxu1 %v2350_v54 }
0x11de   :  { %1724 = vrot.lane.b32.xlu0 %v1723_v57, %s2606_s8  ;;  %v1904_v57 = vld [vmem:[%s3138_s10 + $0x18] sm:$0xff] }
0x11e3   :  { %v1603_v58 = vpop.permute.xlu1 %1602 }
0x11e4   :  { %v1605_v59 = vmul.f32 %v2431_v49, %v1603_v58  ;;  %v805_v49 = vld [vmem:[%s3130_s2 + $0xe] sm:$0x3] }
0x11e5   :  { %vm813_vm7 = vcmp.ne.s32.totalorder %v805_v49, 0 }
0x11e6   :  { %v1618_v60 = vrot.slane %v1605_v59, %v2781_v28  ;;  %v1882_v27 = vsel %vm813_vm7, 1, %v2598_v0  ;;  %v1903_v0 = vld [vmem:[%s3138_s10 + $0x10] sm:$0xff]  ;;  %s2608_s10 = smov [#allocation10]  }
0x11e7   :  { %v2354_v58 = vpack.c.bf16 %v1904_v57, %v1903_v0 }
0x11e8   :  { %1619 = vrot.lane.b32.xlu1 %v1618_v60, %s2606_s8 }
0x1250   :  { %v1725_v18 = vpop.permute.xlu0 %1724 }
0x125a   :  { %v1620_v6 = vpop.permute.xlu1 %1619 }
0x125b   :  { %v3049_v7 = vsel %vm1610_vm4, %v1620_v6, %v3020_v36 }
0x125c   :  { %2262 = vmatmul.mubr.msk.f32.vlgmr.msra.gmra.mrb[8].mxu1 %vm672_vm8, %v3049_v7  ;;  %v1930_v2 = vcombine.low %v3020_v36, %v3049_v7 }
0x125d   :  { %2283 = vmatprep.mubr.msk.f32.mxu1 %vm672_vm8, %v1929_v8  ;;  %2353 = vmatpush3.bf16.msra.mxu1 %v2350_v54 }
0x125e   :  { %2355 = vmatprep.subr.bf16.mxu1 %v2354_v58  ;;  %v1938_v34 = vrot.slane %v1930_v2, %v2781_v28 }
0x1261   :  { %2357 = vmatpush3.bf16.msra.mxu1 %v2354_v58 }
0x132f   :  { %v1704_v30 = vpop.f32.mrb[8].mxu1 }
0x1330   :  { %v1708_v63 = vadd.f32 %v1704_v30, %v787_v4  ;;  %v2263_v9 = vpop.f32.mrb[9].mxu1 }
0x1332   :  { %2434 = vtanh.f32 %v1708_v63  ;;  %v2088_v11 = vmul.f32 -1.442695, %v1708_v63 }
0x1334   :  { %2436 = vpow2.f32 %v2088_v11 }
0x133c   :  { %v2435_v10 = vpop.eup %2434 }
0x133d   :  { %1729 = vrot.lane.b32.xlu1 %v2435_v10, %s2605_s6 }
0x133e   :  { %v2437_v12 = vpop.eup %2436 }
0x133f   :  { %v1712_v14 = vadd.f32 1.0, %v2437_v12 }
0x1341   :  { %2438 = vrcp.f32 %v1712_v14 }
0x134b   :  { %v2439_v15 = vpop.eup %2438 }
0x134c   :  { %v1727_v19 = vmul.f32 %v2439_v15, %v1725_v18 }
0x13af   :  { %v1730_v1 = vpop.permute.xlu1 %1729 }
0x13b0   :  { %v1732_v16 = vmul.f32 %v2439_v15, %v1730_v1 }
0x13b2   :  { %1734 = vrot.lane.b32.xlu1 %v1732_v16, %s2606_s8 }
0x13b6   :  { %1746 = vperm.xlu1 %2385, %v1744_v17  }
0x1424   :  { %v1735_v20 = vpop.permute.xlu1 %1734 }
0x1425   :  { %v1737_v21 = vadd.f32 %v1735_v20, %v1727_v19 }
0x1427   :  { %2440 = vtanh.f32 %v1737_v21  ;;  %v1768_v22 = vrot.slane %v1737_v21, %v2781_v28 }
0x1429   :  { %1769 = vrot.lane.b32.xlu1 %v1768_v22, %s2607_s26 }
0x1431   :  { %v2441_v23 = vpop.eup %2440 }
0x1432   :  { %1740 = vrot.lane.b32.xlu0 %v2441_v23, %s2605_s6 }
0x1435   :  { %v1747_v24 = vpop.permute.xlu1 %1746 }
0x1436   :  { %vm1748_vm6 = vcmp.eq.s32.totalorder %v1747_v24, 1 }
0x149b   :  { %v1770_v25 = vpop.permute.xlu1 %1769 }
0x149c   :  { %v1772_v26 = vsel %vm1748_vm6, %v1770_v25, %v1634_v55 }
0x149d   :  { %v1861_v29 = vrot.slane %v1772_v26, %v2781_v28 }
0x149f   :  { %1862 = vrot.lane.b32.xlu1 %v1861_v29, %s2606_s8 }
0x14a4   :  { %v1741_v31 = vpop.permute.xlu0 %1740 }
0x14a5   :  { %v1743_v32 = vmul.f32 %v2439_v15, %v1741_v31 }
0x14a7   :  { %v1756_v33 = vrot.slane %v1743_v32, %v2781_v28 }
0x14a9   :  { %1757 = vrot.lane.b32.xlu0 %v1756_v33, %s2606_s8 }
0x1511   :  { %v1863_v46 = vpop.permute.xlu1 %1862 }
0x151b   :  { %v1758_v35 = vpop.permute.xlu0 %1757 }
0x151c   :  { %v1760_v37 = vsel %vm1748_vm6, %v1758_v35, %v3049_v7 }
0x151d   :  { %2273 = vmatmul.mubr.msk.f32.vlgmr.msra.gmra.mrb[8].mxu0 %vm672_vm8, %v1760_v37 }
0x15f0   :  { %v1842_v38 = vpop.f32.mrb[8].mxu0 }
0x15f1   :  { %v1846_v40 = vadd.f32 %v1842_v38, %v789_v13  ;;  %v2274_v41 = vpop.f32.mrb[9].mxu0 }
0x15f3   :  { %2442 = vtanh.f32 %v1846_v40  ;;  %v2090_v43 = vmul.f32 -1.442695, %v1846_v40 }
0x15f5   :  { %2444 = vpow2.f32 %v2090_v43 }
0x15fd   :  { %v2443_v42 = vpop.eup %2442 }
0x15fe   :  { %1867 = vrot.lane.b32.xlu0 %v2443_v42, %s2605_s6 }
0x15ff   :  { %v2445_v44 = vpop.eup %2444 }
0x1600   :  { %v1850_v56 = vadd.f32 1.0, %v2445_v44 }
0x1602   :  { %2446 = vrcp.f32 %v1850_v56 }
0x160c   :  { %v2447_v50 = vpop.eup %2446 }
0x160d   :  { %v1865_v47 = vmul.f32 %v2447_v50, %v1863_v46 }
0x1670   :  { %v1868_v53 = vpop.permute.xlu0 %1867 }
0x1671   :  { %v1870_v45 = vmul.f32 %v2447_v50, %v1868_v53 }
0x1673   :  { %1872 = vrot.lane.b32.xlu0 %v1870_v45, %s2606_s8 }
0x1677   :  { %1884 = vperm.xlu0 %2384, %v1882_v27  }
0x16e5   :  { %v1873_v48 = vpop.permute.xlu0 %1872 }
0x16e6   :  { %v1875_v39 = vadd.f32 %v1873_v48, %v1865_v47 }
0x16e8   :  { %2448 = vtanh.f32 %v1875_v39 }
0x16f2   :  { %v2449_v55 = vpop.eup %2448 }
0x16f3   :  { %1878 = vrot.lane.b32.xlu1 %v2449_v55, %s2605_s6  ;;  %s2034_s6 = sshll.u32 %s2608_s10, 4  ;;  %s2035_s6 = int_to_ptr.vmem [resolvable:$true] %s2034_s6 }
0x16f4   :  { %p2543_p5 = scmp.lt.s32.totalorder %s2035_s6, %s2035_s6 }
0x16f6   :  { %v1885_v62 = vpop.permute.xlu0 %1884 }
0x16f7   :  { %vm1886_vm10 = vcmp.eq.s32.totalorder %v1885_v62, 1 }
0x1765   :  { %v1879_v59 = vpop.permute.xlu1 %1878 }
0x1766   :  { %v1881_v60 = vmul.f32 %v2447_v50, %v1879_v59 }
0x1768   :  { %v1894_v61 = vrot.slane %v1881_v60, %v2781_v28 }
0x176a   :  { %1895 = vrot.lane.b32.xlu1 %v1894_v61, %s2606_s8  ;;  %s2538_s8 = scalar_lea.vmem %s2035_s6, 32 }
0x176b   :  { %p2539_p4 = scmp.ne.s32.totalorder %s2035_s6, %s2538_s8  ;;  %p2544_p6 = scmp.lt.s32.totalorder %s2538_s8, %s2538_s8 }
0x176d   :  { %p2545_p7 = por %p2544_p6, %p2543_p5 }
0x176f   :  { %p2546_p8 = pnand %p2545_p7, %p2539_p4 }
0x17dc   :  { %v1896_v5 = vpop.permute.xlu1 %1895 }
0x17dd   :  { %v1898_v6 = vsel %vm1886_vm10, %v1896_v5, %v1760_v37 }
0x17de   :  { %v1931_v8 = vcombine.low %v1760_v37, %v1898_v6  ;;  %1900 = vst.msk [vmem:[#allocation10] sm:$0x3] %vm1899_vm9, %v1898_v6 }
0x17e0   :  { %v1945_v4 = vrot.slane %v1931_v8, %v2781_v28 }
0x17e2   :  { %v1946_v30 = vcombine.low %v1938_v34, %v1945_v4 }
0x17e4   :  { %2284 = vmatmul.mubr.msk.f32.vlgmr.msra.gmra.mrb[10].mxu1 %vm672_vm8, %v1946_v30 }
0x17e5   :  { %2549 = shalt.err (!%p2546_p8)
}
0x17e6   :  { %s2550_s19 = scalar_lea.hbm %s3140_s12, 32 }
0x17e7   :  { %p2551_p9 = scmp.ne.s32.totalorder %s3140_s12, %s2550_s19  ;;  %p2554_p10 = scmp.lt.u32.totalorder %s2550_s19, %s3140_s12 }
0x17e9   :  { %p2556_p11 = pnand %p2554_p10, %p2551_p9 }
0x17eb   :  { %2559 = shalt.err (!%p2556_p11)
}
0x17ec   :  { %2037 = dma.vmem_to_hbm [thread:$0]  %s2035_s6, 32, %s3140_s12, [#allocation4]   ;;  %v2091_v28 = vld [vmem:[%s3139_s11] ss:$0 sm:$0xff] }
0x17ed   :  { %s2609_s29 = smov [#allocation11]  }
0x17ee   :  { %s2043_s30 = sshll.u32 %s2609_s29, 4  ;;  %s2044_s30 = int_to_ptr.vmem [resolvable:$true] %s2043_s30 }
0x17ef   :  { %s2560_s14 = scalar_lea.vmem %s2044_s30, 256  ;;  %p2565_p13 = scmp.lt.s32.totalorder %s2044_s30, %s2044_s30 }
0x17f0   :  { %p2561_p12 = scmp.ne.s32.totalorder %s2044_s30, %s2560_s14  ;;  %p2566_p0 = scmp.lt.s32.totalorder %s2560_s14, %s2560_s14 }
0x17f2   :  { %p2567_p1 = por %p2566_p0, %p2565_p13 }
0x17f4   :  { %p2568_p2 = pnand %p2567_p1, %p2561_p12 }
0x18b7   :  { %v2285_v36 = vpop.f32.mrb[10].mxu1 }
0x18b8   :  { %v2023_v7 = vadd.f32 %v2285_v36, %v2091_v28  ;;  %v2017_v63 = vpop.f32.mrb[11].mxu1 }
0x18b9   :  { %v2018_v9 = vadd.f32 %v2091_v28, %v2017_v63 }
0x18ba   :  { %2027 = vst [vmem:[#allocation11 + $0x8] sm:$0xff] %v2023_v7 }
0x18bb   :  { %2026 = vst [vmem:[#allocation11] sm:$0xff] %v2018_v9 }
0x18bc   :  { %2571 = shalt.err (!%p2568_p2)
}
0x18bd   :  { %s2572_s11 = scalar_lea.hbm %s3141_s13, 256 }
0x18be   :  { %p2573_p3 = scmp.ne.s32.totalorder %s3141_s13, %s2572_s11  ;;  %p2576_p4 = scmp.lt.u32.totalorder %s2572_s11, %s3141_s13 }
0x18c0   :  { %p2578_p5 = pnand %p2576_p4, %p2573_p3 }
0x18c2   :  { %2581 = shalt.err (!%p2578_p5)
}
0x18c3   :  { %2049 = dma.vmem_to_hbm [thread:$0]  %s2044_s30, 256, %s3141_s13, [#allocation12], %s2594_s20, %s2594_s20, %s2595_s21  }
0x18c4   :  { %2588 = dma.done.wait [#allocation4], 32  }
0x18c5   :  { %2589 = vsyncadd [#allocation4], 4294967264 }
0x18c6   :  { %2590 = dma.done.wait [#allocation12], 256  }
0x18c7   :  { %2591 = vsyncadd [#allocation12], 4294967040 }
0x18c8   :  { %2056 = vsyncpa [#allocation3], 1 }
0x18c9   :  { %2057 = vsyncpa [#allocation6], 1 }
0x18ca   :  { %2058 = vsyncpa [#allocation9], 1 }
0x18cb   :  { %2059 = vsyncpa [#allocation4], 1 }
0x18cc   :  { %2060 = vsyncpa [#allocation12], 1 }

</bundles_post_ra>
